<compile_context>
chip_gen: v5e
topology: v5e:2x2
jax: 0.10.0
libtpu: 0.0.40
codegen_flags: <defaults>
</compile_context>

<pallas_src>
import jax
import jax.numpy as jnp
from jax.experimental import pallas as pl
from jax.experimental.pallas import tpu as pltpu

_SQRT_HALF = 0.7071067811865476          # sqrt(1/2): std of real/imag of CN(0,1)
_VMEM_BUDGET_BYTES = 20 * 1024 * 1024    # target double-buffered block footprint
_VMEM_LIMIT_BYTES = 32 * 1024 * 1024     # raise v5e's 16 MiB scoped default
_MAX_BLK = 8192                          # lane columns per grid step (upper cap)


def _round_up(n, m):
    return (n + m - 1) // m * m


def _choose_block(b_align, bytes_per_col):
    """Pick a batch (lane) block size.

    b_align is the 128-aligned batch size; bytes_per_col the single-buffered
    VMEM bytes per batch column.  The block is sized to keep the double-buffered
    footprint under _VMEM_BUDGET_BYTES, rounded to 128 lanes, and capped so the
    grid has at least 2 steps whenever the batch allows it (so DMA/compute
    pipelining and multi-core sharding have something to overlap).
    """
    blk = _VMEM_BUDGET_BYTES // (2 * bytes_per_col)
    blk = max(128, min(_MAX_BLK, (blk // 128) * 128))
    blk = min(blk, b_align)
    if b_align >= 256 and b_align // blk < 2:
        blk = max(128, ((b_align // 2) // 128) * 128)
    return blk


# --------------------------------------------------------------------------- #
# Kernel A: streamed-h complex mat-vec (+ optional pre-generated AWGN planes)  #
# --------------------------------------------------------------------------- #
def _make_apply_kernel(add_awgn):
    """Ref order:
      [std (SMEM f32[1])]                 if add_awgn
      h_re, h_im  (VMEM [T, R, blk])
      x_re, x_im  (VMEM [T, blk])
      [n_re, n_im (VMEM [R, blk])]        if add_awgn  (standard normals)
      y_re, y_im  (VMEM [R, blk])         outputs
    """

    def kernel(*refs):
        i = 0
        std_ref = None
        if add_awgn:
            std_ref = refs[i]; i += 1
        h_re_ref, h_im_ref = refs[i], refs[i + 1]; i += 2
        x_re_ref, x_im_ref = refs[i], refs[i + 1]; i += 2
        if add_awgn:
            n_re_ref, n_im_ref = refs[i], refs[i + 1]; i += 2
        y_re_ref, y_im_ref = refs[i], refs[i + 1]

        R, Bb = y_re_ref.shape
        T = x_re_ref.shape[0]

        x_re = x_re_ref[...]              # [T, Bb]
        x_im = x_im_ref[...]

        # y[r, b] = sum_t h[t, r, b] * x[t, b]   (complex)
        # Statically unrolled T-term add chain over [R, Bb] slabs: pure VPU,
        # batch on the 128-lane axis, no cross-lane reduce, no MXU.
        acc_re = jnp.zeros((R, Bb), jnp.float32)
        acc_im = jnp.zeros((R, Bb), jnp.float32)
        for t in range(T):
            xr = x_re[t:t + 1, :]         # [1, Bb] -> sublane broadcast over R
            xi = x_im[t:t + 1, :]
            hr = h_re_ref[t]              # [R, Bb]
            hi = h_im_ref[t]
            acc_re = acc_re + hr * xr - hi * xi
            acc_im = acc_im + hr * xi + hi * xr

        if add_awgn:
            std = std_ref[0]              # sqrt(no / 2), precomputed in wrapper
            acc_re = acc_re + std * n_re_ref[...]
            acc_im = acc_im + std * n_im_ref[...]

        y_re_ref[...] = acc_re            # [R, Bb] lane-dense unmasked stores
        y_im_ref[...] = acc_im

    return kernel


def _apply_planes(x_re, x_im, h_re, h_im, *, noise_planes=None, noise_std=None):
    """Planes-in / planes-out flat-fading apply (the fast path).

    x_re, x_im : [T, B] float32
    h_re, h_im : [T, R, B] float32
    noise_planes : (n_re, n_im) standard-normal [R, B] float32, or None
    noise_std    : f32 scalar = sqrt(no / 2), or None
    returns (y_re, y_im) : [R, B] float32
    """
    T, B = x_re.shape
    R = h_re.shape[1]
    add_awgn = noise_planes is not None
    assert (noise_planes is None) == (noise_std is None)

    bytes_per_col = 4 * (2 * T * R + 2 * T + 2 * R + (2 * R if add_awgn else 0))
    b_align = _round_up(B, 128)
    blk = _choose_block(b_align, bytes_per_col)
    b_pad = _round_up(B, blk)
    grid = (b_pad // blk,)

    pad = b_pad - B
    if pad:
        x_re = jnp.pad(x_re, ((0, 0), (0, pad)))
        x_im = jnp.pad(x_im, ((0, 0), (0, pad)))
        h_re = jnp.pad(h_re, ((0, 0), (0, 0), (0, pad)))
        h_im = jnp.pad(h_im, ((0, 0), (0, 0), (0, pad)))
        if add_awgn:
            noise_planes = tuple(jnp.pad(p, ((0, 0), (0, pad))) for p in noise_planes)

    smem_spec = pl.BlockSpec(memory_space=pltpu.MemorySpace.SMEM)
    x_spec = pl.BlockSpec((T, blk), lambda i: (0, i))
    h_spec = pl.BlockSpec((T, R, blk), lambda i: (0, 0, i))
    rb_spec = pl.BlockSpec((R, blk), lambda i: (0, i))

    inputs, in_specs = [], []
    if add_awgn:
        inputs.append(jnp.reshape(jnp.asarray(noise_std, jnp.float32), (1,)))
        in_specs.append(smem_spec)
    inputs.extend([h_re, h_im, x_re, x_im])
    in_specs.extend([h_spec, h_spec, x_spec, x_spec])
    if add_awgn:
        inputs.extend(list(noise_planes))
        in_specs.extend([rb_spec, rb_spec])

    y_re, y_im = pl.pallas_call(
        _make_apply_kernel(add_awgn),
        out_shape=(jax.ShapeDtypeStruct((R, b_pad), jnp.float32),
                   jax.ShapeDtypeStruct((R, b_pad), jnp.float32)),
        grid=grid,
        in_specs=in_specs,
        out_specs=(rb_spec, rb_spec),
        compiler_params=pltpu.CompilerParams(
            dimension_semantics=("parallel",),
            vmem_limit_bytes=_VMEM_LIMIT_BYTES),
    )(*inputs)

    if pad:
        y_re = y_re[:, :B]
        y_im = y_im[:, :B]
    return y_re, y_im


# --------------------------------------------------------------------------- #
# Kernel B: closed-form generate+apply when h is never observed               #
#   y[r,b] ~ CN(0, sum_t |x[t,b]|^2 + no)                                     #
# --------------------------------------------------------------------------- #
def _genh_closed_form_kernel(no_ref, x_re_ref, x_im_ref, z_re_ref, z_im_ref,
                             y_re_ref, y_im_ref):
    x_re = x_re_ref[...]                              # [T, Bb]
    x_im = x_im_ref[...]
    # per-column signal power: cheap sublane reduce over T (<= one vreg tall)
    pwr = jnp.sum(x_re * x_re + x_im * x_im, axis=0, keepdims=True)   # [1, Bb]
    s = jnp.sqrt(0.5 * (pwr + no_ref[0]))             # per-real-dim std, [1, Bb]
    y_re_ref[...] = s * z_re_ref[...]                 # [R, Bb] lane-dense stores
    y_im_ref[...] = s * z_im_ref[...]


def _generate_apply_closed_form(x_re, x_im, z_re, z_im, no):
    """Distribution-identical generate+apply (+AWGN) without materializing h.

    x_re, x_im : [T, B] float32
    z_re, z_im : [R, B] float32 standard normals
    no         : f32 scalar noise power per complex dim (0.0 for no AWGN)
    returns (y_re, y_im) : [R, B] float32
    """
    T, B = x_re.shape
    R = z_re.shape[0]

    bytes_per_col = 4 * (2 * T + 4 * R)
    b_align = _round_up(B, 128)
    blk = _choose_block(b_align, bytes_per_col)
    b_pad = _round_up(B, blk)
    grid = (b_pad // blk,)

    pad = b_pad - B
    if pad:
        x_re = jnp.pad(x_re, ((0, 0), (0, pad)))
        x_im = jnp.pad(x_im, ((0, 0), (0, pad)))
        z_re = jnp.pad(z_re, ((0, 0), (0, pad)))
        z_im = jnp.pad(z_im, ((0, 0), (0, pad)))

    smem_spec = pl.BlockSpec(memory_space=pltpu.MemorySpace.SMEM)
    x_spec = pl.BlockSpec((T, blk), lambda i: (0, i))
    rb_spec = pl.BlockSpec((R, blk), lambda i: (0, i))

    no_arr = jnp.reshape(jnp.asarray(no, jnp.float32), (1,))

    y_re, y_im = pl.pallas_call(
        _genh_closed_form_kernel,
        out_shape=(jax.ShapeDtypeStruct((R, b_pad), jnp.float32),
                   jax.ShapeDtypeStruct((R, b_pad), jnp.float32)),
        grid=grid,
        in_specs=[smem_spec, x_spec, x_spec, rb_spec, rb_spec],
        out_specs=(rb_spec, rb_spec),
        compiler_params=pltpu.CompilerParams(
            dimension_semantics=("parallel",),
            vmem_limit_bytes=_VMEM_LIMIT_BYTES),
    )(no_arr, x_re, x_im, z_re, z_im)

    if pad:
        y_re = y_re[:, :B]
        y_im = y_im[:, :B]
    return y_re, y_im


# --------------------------------------------------------------------------- #
# Public API                                                                   #
# --------------------------------------------------------------------------- #
def apply_flat_fading_channel(x, h, no=None, *, add_awgn=True, key=None):
    """Pallas analog of ApplyFlatFadingChannel (complex64 in / complex64 out).

    x : [B, T] complex64, h : [B, R, T] complex64, no : noise power per complex dim.
    For performance-critical callers prefer the planes API (_apply_planes) to
    avoid the complex->planes transposes done here for API compatibility.
    """
    B = x.shape[0]
    R = h.shape[1]
    x_re = jnp.real(x).astype(jnp.float32).T                          # [T, B]
    x_im = jnp.imag(x).astype(jnp.float32).T
    h_re = jnp.transpose(jnp.real(h).astype(jnp.float32), (2, 1, 0))  # [T, R, B]
    h_im = jnp.transpose(jnp.imag(h).astype(jnp.float32), (2, 1, 0))

    noise_planes = noise_std = None
    if add_awgn:
        assert key is not None and no is not None
        kr, ki = jax.random.split(key)
        noise_planes = (jax.random.normal(kr, (R, B), jnp.float32),
                        jax.random.normal(ki, (R, B), jnp.float32))
        noise_std = jnp.sqrt(jnp.asarray(no, jnp.float32) * 0.5)

    y_re, y_im = _apply_planes(x_re, x_im, h_re, h_im,
                               noise_planes=noise_planes, noise_std=noise_std)
    return (y_re.T + 1j * y_im.T).astype(jnp.complex64)


class FlatFadingChannelPallas:
    """Pallas/JAX analog of FlatFadingChannel (spatial_corr=None, complex64)."""

    def __init__(self, num_tx_ant, num_rx_ant, add_awgn=True, return_channel=False):
        self._num_tx_ant = num_tx_ant
        self._num_rx_ant = num_rx_ant
        self._add_awgn = add_awgn
        self._return_channel = return_channel

    def generate_planes(self, key, batch_size):
        """CN(0,1) channel as f32 real/imag planes, already batch-last [T, R, B]
        (the kernel's native layout; no complex64 materialization)."""
        kr, ki = jax.random.split(key)
        shape = (self._num_tx_ant, self._num_rx_ant, batch_size)
        h_re = _SQRT_HALF * jax.random.normal(kr, shape, dtype=jnp.float32)
        h_im = _SQRT_HALF * jax.random.normal(ki, shape, dtype=jnp.float32)
        return h_re, h_im

    @staticmethod
    def planes_to_complex(h_re, h_im):
        """[T, R, B] f32 planes -> [B, R, T] complex64 (only when h is returned)."""
        return (jnp.transpose(h_re, (2, 1, 0))
                + 1j * jnp.transpose(h_im, (2, 1, 0))).astype(jnp.complex64)

    def __call__(self, x, no=None, *, key):
        batch_size = x.shape[0]
        R = self._num_rx_ant
        x_re = jnp.real(x).astype(jnp.float32).T          # [T, B]
        x_im = jnp.imag(x).astype(jnp.float32).T

        if self._add_awgn:
            assert no is not None

        k_h, k_n = jax.random.split(key)

        if self._return_channel:
            # h is observed by the caller: generate it (as f32 planes, batch-last),
            # feed the planes straight to the kernel, build complex64 exactly once.
            h_re, h_im = self.generate_planes(k_h, batch_size)
            noise_planes = noise_std = None
            if self._add_awgn:
                kr, ki = jax.random.split(k_n)
                noise_planes = (jax.random.normal(kr, (R, batch_size), jnp.float32),
                                jax.random.normal(ki, (R, batch_size), jnp.float32))
                noise_std = jnp.sqrt(jnp.asarray(no, jnp.float32) * 0.5)
            y_re, y_im = _apply_planes(x_re, x_im, h_re, h_im,
                                       noise_planes=noise_planes,
                                       noise_std=noise_std)
            y = (y_re.T + 1j * y_im.T).astype(jnp.complex64)
            return y, self.planes_to_complex(h_re, h_im)
        else:
            # h is never observed: closed form y[r,b] ~ CN(0, sum_t|x[t,b]|^2 + no)
            # is distribution-identical (h iid CN(0,1), independent across r,t),
            # needs no [T,R,B] channel matrix and only 2 normals per output elem.
            kr, ki = jax.random.split(k_n)
            z_re = jax.random.normal(kr, (R, batch_size), jnp.float32)
            z_im = jax.random.normal(ki, (R, batch_size), jnp.float32)
            no_val = jnp.asarray(no, jnp.float32) if self._add_awgn else jnp.float32(0.0)
            y_re, y_im = _generate_apply_closed_form(x_re, x_im, z_re, z_im, no_val)
            return (y_re.T + 1j * y_im.T).astype(jnp.complex64)


if __name__ == "__main__":
    # Small shapes consistent with the module: batch=512 (lane-dense), T=8, R=16.
    batch_size, num_tx_ant, num_rx_ant = 512, 8, 16
    no = 0.1  # noise power per complex dimension

    key = jax.random.PRNGKey(0)
    k_x_r, k_x_i, k_c1, k_c2, k_c3, k_c4 = jax.random.split(key, 6)

    x = (jax.random.normal(k_x_r, (batch_size, num_tx_ant), dtype=jnp.float32)
         + 1j * jax.random.normal(k_x_i, (batch_size, num_tx_ant), dtype=jnp.float32)
         ).astype(jnp.complex64)

    # 1) add_awgn=False, return_channel=True -> exact check vs. pure-JAX reference.
    chan0 = FlatFadingChannelPallas(num_tx_ant, num_rx_ant,
                                    add_awgn=False, return_channel=True)
    y0, h0 = chan0(x, key=k_c1)
    y0 = jax.block_until_ready(y0)
    y0_ref = jnp.sum(h0 * x[:, None, :], axis=-1)          # [B, R] complex
    assert y0.shape == (batch_size, num_rx_ant) and y0.dtype == jnp.complex64
    assert jnp.allclose(y0, y0_ref.astype(jnp.complex64), atol=1e-3, rtol=1e-3)

    # 2) add_awgn=True, return_channel=True -> residual noise power check.
    chan1 = FlatFadingChannelPallas(num_tx_ant, num_rx_ant,
                                    add_awgn=True, return_channel=True)
    y1, h1 = chan1(x, no, key=k_c2)
    y1 = jax.block_until_ready(y1)
    resid = y1 - jnp.sum(h1 * x[:, None, :], axis=-1)
    noise_pow = float(jnp.mean(jnp.abs(resid) ** 2))
    assert y1.shape == (batch_size, num_rx_ant) and y1.dtype == jnp.complex64
    assert 0.5 * no < noise_pow < 2.0 * no

    # 3) add_awgn=True, return_channel=False -> closed-form generate+apply;
    #    check output power statistics (E|y|^2 = E[sum|x|^2] + no).
    chan2 = FlatFadingChannelPallas(num_tx_ant, num_rx_ant,
                                    add_awgn=True, return_channel=False)
    y2 = jax.block_until_ready(chan2(x, no, key=k_c3))
    assert y2.shape == (batch_size, num_rx_ant) and y2.dtype == jnp.complex64
    assert bool(jnp.all(jnp.isfinite(jnp.real(y2))) and jnp.all(jnp.isfinite(jnp.imag(y2))))
    expected_pow = float(jnp.mean(jnp.sum(jnp.abs(x) ** 2, axis=-1)) + no)
    got_pow = float(jnp.mean(jnp.abs(y2) ** 2))
    assert 0.5 * expected_pow < got_pow < 2.0 * expected_pow

    # 4) ApplyFlatFadingChannel convenience API (complex h in), add_awgn=False.
    h_ext = (jax.random.normal(k_c4, (batch_size, num_rx_ant, num_tx_ant), jnp.float32)
             * _SQRT_HALF).astype(jnp.complex64)
    y3 = jax.block_until_ready(apply_flat_fading_channel(x, h_ext, add_awgn=False))
    y3_ref = jnp.sum(h_ext * x[:, None, :], axis=-1)
    assert jnp.allclose(y3, y3_ref.astype(jnp.complex64), atol=1e-3, rtol=1e-3)

    print("KERNEL_OK")
</pallas_src>

<mosaic_0001>
module attributes {stable_mosaic.version = 11 : i64} {
  func.func @kernel(%arg0: i32, %arg1: memref<8x16x256xf32, #tpu.memory_space<vmem>>, %arg2: memref<8x16x256xf32, #tpu.memory_space<vmem>>, %arg3: memref<8x256xf32, #tpu.memory_space<vmem>>, %arg4: memref<8x256xf32, #tpu.memory_space<vmem>>, %arg5: memref<16x256xf32, #tpu.memory_space<vmem>>, %arg6: memref<16x256xf32, #tpu.memory_space<vmem>>) attributes {dimension_semantics = [#tpu.dimension_semantics<parallel>], iteration_bounds = array<i64: 2>, scalar_prefetch = 0 : i64, scratch_operands = 0 : i64, tpu.core_type = #tpu.core_type<tc>, window_params = [{transform_indices = @transform_0, window_bounds = array<i64: 8, 16, 256>}, {transform_indices = @transform_1, window_bounds = array<i64: 8, 16, 256>}, {transform_indices = @transform_2, window_bounds = array<i64: 8, 256>}, {transform_indices = @transform_3, window_bounds = array<i64: 8, 256>}, {transform_indices = @transform_4, window_bounds = array<i64: 16, 256>}, {transform_indices = @transform_5, window_bounds = array<i64: 16, 256>}]} {
    %c0 = arith.constant 0 : index
    %c0_0 = arith.constant 0 : index
    %0 = vector.load %arg3[%c0, %c0_0] : memref<8x256xf32, #tpu.memory_space<vmem>>, vector<8x256xf32>
    %c0_1 = arith.constant 0 : index
    %c0_2 = arith.constant 0 : index
    %1 = vector.load %arg4[%c0_1, %c0_2] : memref<8x256xf32, #tpu.memory_space<vmem>>, vector<8x256xf32>
    %cst = arith.constant 0.000000e+00 : f32
    %2 = vector.broadcast %cst : f32 to vector<16x256xf32>
    %cst_3 = arith.constant 0.000000e+00 : f32
    %3 = vector.broadcast %cst_3 : f32 to vector<16x256xf32>
    %4 = vector.extract_strided_slice %0 {offsets = [0, 0], sizes = [1, 256], strides = [1, 1]} : vector<8x256xf32> to vector<1x256xf32>
    %5 = vector.extract_strided_slice %1 {offsets = [0, 0], sizes = [1, 256], strides = [1, 1]} : vector<8x256xf32> to vector<1x256xf32>
    %c0_4 = arith.constant 0 : index
    %c0_5 = arith.constant 0 : index
    %c0_6 = arith.constant 0 : index
    %6 = vector.load %arg1[%c0_4, %c0_5, %c0_6] : memref<8x16x256xf32, #tpu.memory_space<vmem>>, vector<1x16x256xf32>
    %7 = vector.shape_cast %6 : vector<1x16x256xf32> to vector<16x256xf32>
    %c0_7 = arith.constant 0 : index
    %c0_8 = arith.constant 0 : index
    %c0_9 = arith.constant 0 : index
    %8 = vector.load %arg2[%c0_7, %c0_8, %c0_9] : memref<8x16x256xf32, #tpu.memory_space<vmem>>, vector<1x16x256xf32>
    %9 = vector.shape_cast %8 : vector<1x16x256xf32> to vector<16x256xf32>
    %10 = vector.broadcast %4 : vector<1x256xf32> to vector<16x256xf32>
    %11 = arith.mulf %7, %10 : vector<16x256xf32>
    %12 = arith.addf %2, %11 : vector<16x256xf32>
    %13 = vector.broadcast %5 : vector<1x256xf32> to vector<16x256xf32>
    %14 = arith.mulf %9, %13 : vector<16x256xf32>
    %15 = arith.subf %12, %14 : vector<16x256xf32>
    %16 = vector.broadcast %5 : vector<1x256xf32> to vector<16x256xf32>
    %17 = arith.mulf %7, %16 : vector<16x256xf32>
    %18 = arith.addf %3, %17 : vector<16x256xf32>
    %19 = vector.broadcast %4 : vector<1x256xf32> to vector<16x256xf32>
    %20 = arith.mulf %9, %19 : vector<16x256xf32>
    %21 = arith.addf %18, %20 : vector<16x256xf32>
    %22 = vector.extract_strided_slice %0 {offsets = [1, 0], sizes = [1, 256], strides = [1, 1]} : vector<8x256xf32> to vector<1x256xf32>
    %23 = vector.extract_strided_slice %1 {offsets = [1, 0], sizes = [1, 256], strides = [1, 1]} : vector<8x256xf32> to vector<1x256xf32>
    %c1 = arith.constant 1 : index
    %c0_10 = arith.constant 0 : index
    %c0_11 = arith.constant 0 : index
    %24 = vector.load %arg1[%c1, %c0_10, %c0_11] : memref<8x16x256xf32, #tpu.memory_space<vmem>>, vector<1x16x256xf32>
    %25 = vector.shape_cast %24 : vector<1x16x256xf32> to vector<16x256xf32>
    %c1_12 = arith.constant 1 : index
    %c0_13 = arith.constant 0 : index
    %c0_14 = arith.constant 0 : index
    %26 = vector.load %arg2[%c1_12, %c0_13, %c0_14] : memref<8x16x256xf32, #tpu.memory_space<vmem>>, vector<1x16x256xf32>
    %27 = vector.shape_cast %26 : vector<1x16x256xf32> to vector<16x256xf32>
    %28 = vector.broadcast %22 : vector<1x256xf32> to vector<16x256xf32>
    %29 = arith.mulf %25, %28 : vector<16x256xf32>
    %30 = arith.addf %15, %29 : vector<16x256xf32>
    %31 = vector.broadcast %23 : vector<1x256xf32> to vector<16x256xf32>
    %32 = arith.mulf %27, %31 : vector<16x256xf32>
    %33 = arith.subf %30, %32 : vector<16x256xf32>
    %34 = vector.broadcast %23 : vector<1x256xf32> to vector<16x256xf32>
    %35 = arith.mulf %25, %34 : vector<16x256xf32>
    %36 = arith.addf %21, %35 : vector<16x256xf32>
    %37 = vector.broadcast %22 : vector<1x256xf32> to vector<16x256xf32>
    %38 = arith.mulf %27, %37 : vector<16x256xf32>
    %39 = arith.addf %36, %38 : vector<16x256xf32>
    %40 = vector.extract_strided_slice %0 {offsets = [2, 0], sizes = [1, 256], strides = [1, 1]} : vector<8x256xf32> to vector<1x256xf32>
    %41 = vector.extract_strided_slice %1 {offsets = [2, 0], sizes = [1, 256], strides = [1, 1]} : vector<8x256xf32> to vector<1x256xf32>
    %c2 = arith.constant 2 : index
    %c0_15 = arith.constant 0 : index
    %c0_16 = arith.constant 0 : index
    %42 = vector.load %arg1[%c2, %c0_15, %c0_16] : memref<8x16x256xf32, #tpu.memory_space<vmem>>, vector<1x16x256xf32>
    %43 = vector.shape_cast %42 : vector<1x16x256xf32> to vector<16x256xf32>
    %c2_17 = arith.constant 2 : index
    %c0_18 = arith.constant 0 : index
    %c0_19 = arith.constant 0 : index
    %44 = vector.load %arg2[%c2_17, %c0_18, %c0_19] : memref<8x16x256xf32, #tpu.memory_space<vmem>>, vector<1x16x256xf32>
    %45 = vector.shape_cast %44 : vector<1x16x256xf32> to vector<16x256xf32>
    %46 = vector.broadcast %40 : vector<1x256xf32> to vector<16x256xf32>
    %47 = arith.mulf %43, %46 : vector<16x256xf32>
    %48 = arith.addf %33, %47 : vector<16x256xf32>
    %49 = vector.broadcast %41 : vector<1x256xf32> to vector<16x256xf32>
    %50 = arith.mulf %45, %49 : vector<16x256xf32>
    %51 = arith.subf %48, %50 : vector<16x256xf32>
    %52 = vector.broadcast %41 : vector<1x256xf32> to vector<16x256xf32>
    %53 = arith.mulf %43, %52 : vector<16x256xf32>
    %54 = arith.addf %39, %53 : vector<16x256xf32>
    %55 = vector.broadcast %40 : vector<1x256xf32> to vector<16x256xf32>
    %56 = arith.mulf %45, %55 : vector<16x256xf32>
    %57 = arith.addf %54, %56 : vector<16x256xf32>
    %58 = vector.extract_strided_slice %0 {offsets = [3, 0], sizes = [1, 256], strides = [1, 1]} : vector<8x256xf32> to vector<1x256xf32>
    %59 = vector.extract_strided_slice %1 {offsets = [3, 0], sizes = [1, 256], strides = [1, 1]} : vector<8x256xf32> to vector<1x256xf32>
    %c3 = arith.constant 3 : index
    %c0_20 = arith.constant 0 : index
    %c0_21 = arith.constant 0 : index
    %60 = vector.load %arg1[%c3, %c0_20, %c0_21] : memref<8x16x256xf32, #tpu.memory_space<vmem>>, vector<1x16x256xf32>
    %61 = vector.shape_cast %60 : vector<1x16x256xf32> to vector<16x256xf32>
    %c3_22 = arith.constant 3 : index
    %c0_23 = arith.constant 0 : index
    %c0_24 = arith.constant 0 : index
    %62 = vector.load %arg2[%c3_22, %c0_23, %c0_24] : memref<8x16x256xf32, #tpu.memory_space<vmem>>, vector<1x16x256xf32>
    %63 = vector.shape_cast %62 : vector<1x16x256xf32> to vector<16x256xf32>
    %64 = vector.broadcast %58 : vector<1x256xf32> to vector<16x256xf32>
    %65 = arith.mulf %61, %64 : vector<16x256xf32>
    %66 = arith.addf %51, %65 : vector<16x256xf32>
    %67 = vector.broadcast %59 : vector<1x256xf32> to vector<16x256xf32>
    %68 = arith.mulf %63, %67 : vector<16x256xf32>
    %69 = arith.subf %66, %68 : vector<16x256xf32>
    %70 = vector.broadcast %59 : vector<1x256xf32> to vector<16x256xf32>
    %71 = arith.mulf %61, %70 : vector<16x256xf32>
    %72 = arith.addf %57, %71 : vector<16x256xf32>
    %73 = vector.broadcast %58 : vector<1x256xf32> to vector<16x256xf32>
    %74 = arith.mulf %63, %73 : vector<16x256xf32>
    %75 = arith.addf %72, %74 : vector<16x256xf32>
    %76 = vector.extract_strided_slice %0 {offsets = [4, 0], sizes = [1, 256], strides = [1, 1]} : vector<8x256xf32> to vector<1x256xf32>
    %77 = vector.extract_strided_slice %1 {offsets = [4, 0], sizes = [1, 256], strides = [1, 1]} : vector<8x256xf32> to vector<1x256xf32>
    %c4 = arith.constant 4 : index
    %c0_25 = arith.constant 0 : index
    %c0_26 = arith.constant 0 : index
    %78 = vector.load %arg1[%c4, %c0_25, %c0_26] : memref<8x16x256xf32, #tpu.memory_space<vmem>>, vector<1x16x256xf32>
    %79 = vector.shape_cast %78 : vector<1x16x256xf32> to vector<16x256xf32>
    %c4_27 = arith.constant 4 : index
    %c0_28 = arith.constant 0 : index
    %c0_29 = arith.constant 0 : index
    %80 = vector.load %arg2[%c4_27, %c0_28, %c0_29] : memref<8x16x256xf32, #tpu.memory_space<vmem>>, vector<1x16x256xf32>
    %81 = vector.shape_cast %80 : vector<1x16x256xf32> to vector<16x256xf32>
    %82 = vector.broadcast %76 : vector<1x256xf32> to vector<16x256xf32>
    %83 = arith.mulf %79, %82 : vector<16x256xf32>
    %84 = arith.addf %69, %83 : vector<16x256xf32>
    %85 = vector.broadcast %77 : vector<1x256xf32> to vector<16x256xf32>
    %86 = arith.mulf %81, %85 : vector<16x256xf32>
    %87 = arith.subf %84, %86 : vector<16x256xf32>
    %88 = vector.broadcast %77 : vector<1x256xf32> to vector<16x256xf32>
    %89 = arith.mulf %79, %88 : vector<16x256xf32>
    %90 = arith.addf %75, %89 : vector<16x256xf32>
    %91 = vector.broadcast %76 : vector<1x256xf32> to vector<16x256xf32>
    %92 = arith.mulf %81, %91 : vector<16x256xf32>
    %93 = arith.addf %90, %92 : vector<16x256xf32>
    %94 = vector.extract_strided_slice %0 {offsets = [5, 0], sizes = [1, 256], strides = [1, 1]} : vector<8x256xf32> to vector<1x256xf32>
    %95 = vector.extract_strided_slice %1 {offsets = [5, 0], sizes = [1, 256], strides = [1, 1]} : vector<8x256xf32> to vector<1x256xf32>
    %c5 = arith.constant 5 : index
    %c0_30 = arith.constant 0 : index
    %c0_31 = arith.constant 0 : index
    %96 = vector.load %arg1[%c5, %c0_30, %c0_31] : memref<8x16x256xf32, #tpu.memory_space<vmem>>, vector<1x16x256xf32>
    %97 = vector.shape_cast %96 : vector<1x16x256xf32> to vector<16x256xf32>
    %c5_32 = arith.constant 5 : index
    %c0_33 = arith.constant 0 : index
    %c0_34 = arith.constant 0 : index
    %98 = vector.load %arg2[%c5_32, %c0_33, %c0_34] : memref<8x16x256xf32, #tpu.memory_space<vmem>>, vector<1x16x256xf32>
    %99 = vector.shape_cast %98 : vector<1x16x256xf32> to vector<16x256xf32>
    %100 = vector.broadcast %94 : vector<1x256xf32> to vector<16x256xf32>
    %101 = arith.mulf %97, %100 : vector<16x256xf32>
    %102 = arith.addf %87, %101 : vector<16x256xf32>
    %103 = vector.broadcast %95 : vector<1x256xf32> to vector<16x256xf32>
    %104 = arith.mulf %99, %103 : vector<16x256xf32>
    %105 = arith.subf %102, %104 : vector<16x256xf32>
    %106 = vector.broadcast %95 : vector<1x256xf32> to vector<16x256xf32>
    %107 = arith.mulf %97, %106 : vector<16x256xf32>
    %108 = arith.addf %93, %107 : vector<16x256xf32>
    %109 = vector.broadcast %94 : vector<1x256xf32> to vector<16x256xf32>
    %110 = arith.mulf %99, %109 : vector<16x256xf32>
    %111 = arith.addf %108, %110 : vector<16x256xf32>
    %112 = vector.extract_strided_slice %0 {offsets = [6, 0], sizes = [1, 256], strides = [1, 1]} : vector<8x256xf32> to vector<1x256xf32>
    %113 = vector.extract_strided_slice %1 {offsets = [6, 0], sizes = [1, 256], strides = [1, 1]} : vector<8x256xf32> to vector<1x256xf32>
    %c6 = arith.constant 6 : index
    %c0_35 = arith.constant 0 : index
    %c0_36 = arith.constant 0 : index
    %114 = vector.load %arg1[%c6, %c0_35, %c0_36] : memref<8x16x256xf32, #tpu.memory_space<vmem>>, vector<1x16x256xf32>
    %115 = vector.shape_cast %114 : vector<1x16x256xf32> to vector<16x256xf32>
    %c6_37 = arith.constant 6 : index
    %c0_38 = arith.constant 0 : index
    %c0_39 = arith.constant 0 : index
    %116 = vector.load %arg2[%c6_37, %c0_38, %c0_39] : memref<8x16x256xf32, #tpu.memory_space<vmem>>, vector<1x16x256xf32>
    %117 = vector.shape_cast %116 : vector<1x16x256xf32> to vector<16x256xf32>
    %118 = vector.broadcast %112 : vector<1x256xf32> to vector<16x256xf32>
    %119 = arith.mulf %115, %118 : vector<16x256xf32>
    %120 = arith.addf %105, %119 : vector<16x256xf32>
    %121 = vector.broadcast %113 : vector<1x256xf32> to vector<16x256xf32>
    %122 = arith.mulf %117, %121 : vector<16x256xf32>
    %123 = arith.subf %120, %122 : vector<16x256xf32>
    %124 = vector.broadcast %113 : vector<1x256xf32> to vector<16x256xf32>
    %125 = arith.mulf %115, %124 : vector<16x256xf32>
    %126 = arith.addf %111, %125 : vector<16x256xf32>
    %127 = vector.broadcast %112 : vector<1x256xf32> to vector<16x256xf32>
    %128 = arith.mulf %117, %127 : vector<16x256xf32>
    %129 = arith.addf %126, %128 : vector<16x256xf32>
    %130 = vector.extract_strided_slice %0 {offsets = [7, 0], sizes = [1, 256], strides = [1, 1]} : vector<8x256xf32> to vector<1x256xf32>
    %131 = vector.extract_strided_slice %1 {offsets = [7, 0], sizes = [1, 256], strides = [1, 1]} : vector<8x256xf32> to vector<1x256xf32>
    %c7 = arith.constant 7 : index
    %c0_40 = arith.constant 0 : index
    %c0_41 = arith.constant 0 : index
    %132 = vector.load %arg1[%c7, %c0_40, %c0_41] : memref<8x16x256xf32, #tpu.memory_space<vmem>>, vector<1x16x256xf32>
    %133 = vector.shape_cast %132 : vector<1x16x256xf32> to vector<16x256xf32>
    %c7_42 = arith.constant 7 : index
    %c0_43 = arith.constant 0 : index
    %c0_44 = arith.constant 0 : index
    %134 = vector.load %arg2[%c7_42, %c0_43, %c0_44] : memref<8x16x256xf32, #tpu.memory_space<vmem>>, vector<1x16x256xf32>
    %135 = vector.shape_cast %134 : vector<1x16x256xf32> to vector<16x256xf32>
    %136 = vector.broadcast %130 : vector<1x256xf32> to vector<16x256xf32>
    %137 = arith.mulf %133, %136 : vector<16x256xf32>
    %138 = arith.addf %123, %137 : vector<16x256xf32>
    %139 = vector.broadcast %131 : vector<1x256xf32> to vector<16x256xf32>
    %140 = arith.mulf %135, %139 : vector<16x256xf32>
    %141 = arith.subf %138, %140 : vector<16x256xf32>
    %142 = vector.broadcast %131 : vector<1x256xf32> to vector<16x256xf32>
    %143 = arith.mulf %133, %142 : vector<16x256xf32>
    %144 = arith.addf %129, %143 : vector<16x256xf32>
    %145 = vector.broadcast %130 : vector<1x256xf32> to vector<16x256xf32>
    %146 = arith.mulf %135, %145 : vector<16x256xf32>
    %147 = arith.addf %144, %146 : vector<16x256xf32>
    %c0_45 = arith.constant 0 : index
    %c0_46 = arith.constant 0 : index
    %148 = vector.load %arg5[%c0_45, %c0_46] : memref<16x256xf32, #tpu.memory_space<vmem>>, vector<16x256xf32>
    tpu.vector_store %arg5[%c0_45, %c0_46], %141 {strides = array<i32>} : memref<16x256xf32, #tpu.memory_space<vmem>>, vector<16x256xf32>,
    %c0_47 = arith.constant 0 : index
    %c0_48 = arith.constant 0 : index
    %149 = vector.load %arg6[%c0_47, %c0_48] : memref<16x256xf32, #tpu.memory_space<vmem>>, vector<16x256xf32>
    tpu.vector_store %arg6[%c0_47, %c0_48], %147 {strides = array<i32>} : memref<16x256xf32, #tpu.memory_space<vmem>>, vector<16x256xf32>,
    return
  }
  func.func @transform_0(%arg0: i32) -> (i32, i32, i32) {
    %c0_i32 = arith.constant 0 : i32
    %c0_i32_0 = arith.constant 0 : i32
    %c0_i32_1 = arith.constant 0 : i32
    return %c0_i32, %c0_i32_0, %arg0 : i32, i32, i32
  }
  func.func @transform_1(%arg0: i32) -> (i32, i32, i32) {
    %c0_i32 = arith.constant 0 : i32
    %c0_i32_0 = arith.constant 0 : i32
    %c0_i32_1 = arith.constant 0 : i32
    return %c0_i32, %c0_i32_0, %arg0 : i32, i32, i32
  }
  func.func @transform_2(%arg0: i32) -> (i32, i32) {
    %c0_i32 = arith.constant 0 : i32
    %c0_i32_0 = arith.constant 0 : i32
    return %c0_i32, %arg0 : i32, i32
  }
  func.func @transform_3(%arg0: i32) -> (i32, i32) {
    %c0_i32 = arith.constant 0 : i32
    %c0_i32_0 = arith.constant 0 : i32
    return %c0_i32, %arg0 : i32, i32
  }
  func.func @transform_4(%arg0: i32) -> (i32, i32) {
    %c0_i32 = arith.constant 0 : i32
    %c0_i32_0 = arith.constant 0 : i32
    return %c0_i32, %arg0 : i32, i32
  }
  func.func @transform_5(%arg0: i32) -> (i32, i32) {
    %c0_i32 = arith.constant 0 : i32
    %c0_i32_0 = arith.constant 0 : i32
    return %c0_i32, %arg0 : i32, i32
  }
}

</mosaic_0001>

<bundles_post_ra>
// kernel: tpu_custom_call.1
= control target key start
LH: loop header
LB: loop body
LE: loop exit
PB: predicated region body
PF: predicated region fallthrough
CT: control target
= control target key end

     0   :  { %s2221_s0 = inlined_call_operand.hbm [shape: f32[8,16,512], index: 0, kind: input, shape index: {}]   ;;  %s2222_s1 = inlined_call_operand.hbm [shape: f32[8,16,512], index: 1, kind: input, shape index: {}]   ;;  %s2223_s2 = inlined_call_operand.hbm [shape: f32[8,512], index: 2, kind: input, shape index: {}]   ;;  %s2224_s3 = inlined_call_operand.hbm [shape: f32[8,512], index: 3, kind: input, shape index: {}]   ;;  %s2225_s4 = inlined_call_operand.hbm [shape: f32[16,512], index: 4, kind: output, shape index: {0}]   ;;  %s2226_s5 = inlined_call_operand.hbm [shape: f32[16,512], index: 5, kind: output, shape index: {1}]  }
   0x1   :  { %2299 = sst [smem:[#allocation81_spill]] %s2222_s1 }
   0x2   :  { %11 = vsyncpa [#allocation3], 0 }
   0x3   :  { %13 = vsyncpa [#allocation3 + $0x1], 0 }
   0x4   :  { %14 = vsyncpa [#allocation6], 0 }
   0x5   :  { %16 = vsyncpa [#allocation6 + $0x1], 0 }
   0x6   :  { %17 = vsyncpa [#allocation9], 0 }
   0x7   :  { %19 = vsyncpa [#allocation9 + $0x1], 0 }
   0x8   :  { %20 = vsyncpa [#allocation4], 0 }
   0x9   :  { %22 = vsyncpa [#allocation4 + $0x1], 0 }
   0xa   :  { %23 = vsyncpa [#allocation12], 0 }
   0xb   :  { %25 = vsyncpa [#allocation12 + $0x1], 0  ;;  %s1397_s18 = smov 0   ;;  %s1399_s19 = smov 0  }
   0xc   :  { %s1401_s20 = smov 0   ;;  %s1403_s21 = smov 0  }
   0xd LB: > { %2300 = sst [smem:[#allocation18_spill]] %s1355_s20  ;;  %s1418_s22 = sadd.s32 4294967295, %s1359_s21   ;;  %s1359_s21 = sphi %s1403_s21, %s2437_s21   ;;  %s1355_s20 = sphi %s1401_s20, %s2439_s20   ;;  %s1351_s19 = sphi %s1399_s19, %s2441_s19   ;;  %s1347_s18 = sphi %s1397_s18, %s2440_s18  }
   0xe   : > { %2301 = sst [smem:[#allocation19_spill]] %s1359_s21  ;;  %s969_s23 = sadd.s32 4294967294, %s1359_s21  }
   0xf   : > { %s1422_s24 = sadd.s32 1, %s1359_s21   ;;  %s38_s25 = sadd.s32 1, %s1355_s20 }
  0x10   : > { %2302 = sst [smem:[#allocation20_spill]] %s1422_s24  ;;  %s35_s26 = ssub.s32 %s1359_s21, %s1422_s24 }
  0x11   : > { %p45_p0 = scmp.ne.s32.totalorder %s1355_s20, %s1351_s19  ;;  %p36_p1 = scmp.eq.s32.totalorder %s35_s26, 0 }
  0x12   : > { %p46_p2 = scmp.eq.s32.totalorder %s1359_s21, 0  ;;  %p51_p3 = scmp.ne.s32.totalorder %s1351_s19, %s1347_s18 }
  0x13   : > { %p52_p4 = scmp.eq.s32.totalorder %s1418_s22, 0  ;;  %p153_p7 = scmp.eq.s32.totalorder %s1418_s22, 1 }
  0x14   : > { %s1434_s27 = scalar_select %p36_p1, %s1355_s20, %s38_s25  }
  0x15   : > { %p47_p5 = por %p46_p2, %p45_p0  ;;  %p1436_p6 = por %p52_p4, %p51_p3 }
  0x16   : > { %2303 = sst [smem:[#allocation21_spill]] %s1434_s27  ;;  %p159_p8 = scmp.eq.s32.totalorder %s969_s23, 1 }
  0x17   : > { %p971_p9 = scmp.ge.s32.totalorder %s1359_s21, 2  ;;  %p1093_p10 = scmp.lt.s32.totalorder %s1359_s21, 2 }
  0x18   : > { %p1443_p11 = por %p153_p7, %p45_p0  ;;  %p1447_p12 = por %p159_p8, %p51_p3 }
  0x19   : > { %s1452_s6 = sand.u32 1, %s1355_s20   ;;  %s1455_s7 = sshll.u32 %s1359_s21, 4 }
  0x1a   : > { %s2306_s30 = scalar_select %p1447_p12, 1, 0 }
  0x1b   : > { %s2227_s8 = sshll.u32 %s1452_s6, 8  ;;  %p1458_p13 = pnand %p1093_p10, %p47_p5 }
  0x1c   : > { %2307 = sst [smem:[#allocation22_spill]] %s2306_s30  ;;  %s227_s10 = sand.u32 1, %s1359_s21  }
  0x1d   : > { %s2309_s1 = sld [smem:[#allocation81_spill]]  ;;  %s231_s15 = scalar_lea.vmem [#allocation5], %s2227_s8 }
  0x1e   : > { %s239_s16 = sshll.u32 %s231_s15, 4  ;;  %s1469_s17 = scalar_lea.sflag [#allocation6], %s227_s10  ;;  %s240_s16 = int_to_ptr.vmem [resolvable:$true] %s239_s16 }
  0x1f   : > { %p1137_p1 = pneg %p1458_p13 }
  0x23   : > { %s236_s13 = scalar_lea.hbm %s2309_s1, %s1455_s7  ;;  %s1140_s12 = scalar_lea.hbm %s2309_s1, 512 }
  0x24   : > { %s237_s14 = sshll.u32 %s236_s13, 4  ;;  %s238_s14 = int_to_ptr.hbm [resolvable:$true] %s237_s14 }
  0x25   : > { %s1133_s23 = sshra.s32 %s238_s14, 4  ;;  %s1134_s23 = int_to_ptr.hbm [resolvable:$true] %s1133_s23 }
  0x26   : > { %s1135_s25 = scalar_lea.hbm %s1134_s23, 256  ;;  %p1141_p4 = scmp.lt.s32.totalorder %s1134_s23, %s2309_s1 }
  0x27   : > { %p1136_p0 = scmp.ne.s32.totalorder %s1134_s23, %s1135_s25  ;;  %p1142_p5 = scmp.lt.s32.totalorder %s1140_s12, %s1135_s25 }
  0x29   : > { %p1138_p2 = pnand %p1137_p1, %p1136_p0  ;;  %p1143_p7 = por %p1142_p5, %p1141_p4 }
  0x2b   : > { %p1139_p3 = pneg %p1138_p2 }
  0x2d   : > { %p1144_p8 = pnand %p1143_p7, %p1139_p3 }
  0x2f   : > { %1147 = shalt.err (!%p1144_p8)
}
  0x30   : > { %s2231_s10 = smov 512   ;;  %s1362_s8 = smov 256  }
  0x31   : > { %s1363_s27 = smov 16   ;;  %p984_p10 = scmp.ge.s32.totalorder %s1359_s21, 1 }
  0x32   : > { %1079 = dma.hbm_to_vmem [thread:$0]  (!%p1458_p13), %s238_s14, 4096, %s240_s16, %s1469_s17, %s2231_s10, %s1362_s8, %s1363_s27  }
  0x33   : > { %p287_p0 = scmp.lt.s32.totalorder %s1359_s21, 3  ;;  %s214_s11 = scalar_lea.hbm %s2221_s0, %s1455_s7 }
  0x34   : > { %s215_s12 = sshll.u32 %s214_s11, 4  ;;  %s2311_s13 = sshll.u32 %s1452_s6, 8  ;;  %s216_s12 = int_to_ptr.hbm [resolvable:$true] %s215_s12 }
  0x35   : > { %p1489_p2 = pnand %p984_p10, %p287_p0  ;;  %s209_s15 = scalar_lea.vmem [#allocation2], %s2311_s13 }
  0x36   : > { %s217_s1 = sshll.u32 %s209_s15, 4  ;;  %s206_s20 = scalar_lea.sflag [#allocation3], %s1452_s6  ;;  %s218_s1 = int_to_ptr.vmem [resolvable:$true] %s217_s1 }
  0x37   : > { %s1163_s24 = sshra.s32 %s216_s12, 4  ;;  %s1170_s25 = scalar_lea.hbm %s2221_s0, 512  ;;  %s1164_s24 = int_to_ptr.hbm [resolvable:$true] %s1163_s24 }
  0x38   : > { %s1165_s14 = scalar_lea.hbm %s1164_s24, 256  ;;  %p1171_p7 = scmp.lt.s32.totalorder %s1164_s24, %s2221_s0 }
  0x39   : > { %p1166_p3 = scmp.ne.s32.totalorder %s1164_s24, %s1165_s14  ;;  %p1172_p8 = scmp.lt.s32.totalorder %s1170_s25, %s1165_s14 }
  0x3b   : > { %p1168_p4 = pnand %p1166_p3, %p1137_p1  ;;  %p1173_p10 = por %p1172_p8, %p1171_p7 }
  0x3d   : > { %p1169_p5 = pneg %p1168_p4 }
  0x3f   : > { %p1174_p0 = pnand %p1173_p10, %p1169_p5 }
  0x41   : > { %1177 = shalt.err (!%p1174_p0)
}
  0x42   : > { %s2312_s13 = smov 512   ;;  %s978_s15 = sshll.u32 %s1452_s6, 4 }
  0x43   : > { %1076 = dma.hbm_to_vmem [thread:$0]  (!%p1458_p13), %s216_s12, 4096, %s218_s1, %s206_s20, %s2312_s13, %s1362_s8, %s1363_s27  }
  0x44   : > { %s258_s16 = scalar_lea.hbm %s2223_s2, %s1455_s7  ;;  %s253_s24 = scalar_lea.vmem [#allocation7], %s978_s15 }
  0x45   : > { %s260_s30 = sshll.u32 %s258_s16, 4  ;;  %s262_s14 = sshll.u32 %s253_s24, 4  ;;  %s261_s30 = int_to_ptr.hbm [resolvable:$true] %s260_s30  ;;  %s263_s14 = int_to_ptr.vmem [resolvable:$true] %s262_s14 }
  0x46   : > { %s1193_s25 = sshra.s32 %s261_s30, 4  ;;  %s1200_s20 = scalar_lea.hbm %s2223_s2, 32  ;;  %s1194_s25 = int_to_ptr.hbm [resolvable:$true] %s1193_s25 }
  0x47   : > { %s1195_s26 = scalar_lea.hbm %s1194_s25, 16  ;;  %p1201_p7 = scmp.lt.s32.totalorder %s1194_s25, %s2223_s2 }
  0x48   : > { %p1196_p3 = scmp.ne.s32.totalorder %s1194_s25, %s1195_s26  ;;  %p1202_p8 = scmp.lt.s32.totalorder %s1200_s20, %s1195_s26 }
  0x4a   : > { %p1198_p4 = pnand %p1196_p3, %p1137_p1  ;;  %p1203_p10 = por %p1202_p8, %p1201_p7 }
  0x4c   : > { %p1199_p5 = pneg %p1198_p4 }
  0x4e   : > { %p1204_p0 = pnand %p1203_p10, %p1199_p5 }
  0x50   : > { %1207 = shalt.err (!%p1204_p0)
}
  0x51   : > { %1082 = dma.hbm_to_vmem [thread:$0]  (!%p1458_p13), %s261_s30, 256, %s263_s14, %s1469_s17  }
  0x52   : > { %s278_s13 = scalar_lea.hbm %s2224_s3, %s1455_s7  ;;  %s273_s16 = scalar_lea.vmem [#allocation8], %s978_s15 }
  0x53   : > { %s280_s10 = sshll.u32 %s278_s13, 4  ;;  %s282_s24 = sshll.u32 %s273_s16, 4  ;;  %s281_s10 = int_to_ptr.hbm [resolvable:$true] %s280_s10  ;;  %s283_s24 = int_to_ptr.vmem [resolvable:$true] %s282_s24 }
  0x54   : > { %s270_s25 = scalar_lea.sflag [#allocation9], %s1452_s6  ;;  %s1223_s26 = sshra.s32 %s281_s10, 4  ;;  %s1224_s26 = int_to_ptr.hbm [resolvable:$true] %s1223_s26 }
  0x55   : > { %s1225_s11 = scalar_lea.hbm %s1224_s26, 16  ;;  %s1230_s17 = scalar_lea.hbm %s2224_s3, 32 }
  0x56   : > { %p1226_p3 = scmp.ne.s32.totalorder %s1224_s26, %s1225_s11  ;;  %p1231_p7 = scmp.lt.s32.totalorder %s1224_s26, %s2224_s3 }
  0x57   : > { %p1232_p8 = scmp.lt.s32.totalorder %s1230_s17, %s1225_s11 }
  0x58   : > { %p1228_p4 = pnand %p1226_p3, %p1137_p1 }
  0x59   : > { %p1233_p10 = por %p1232_p8, %p1231_p7 }
  0x5a   : > { %p1229_p5 = pneg %p1228_p4 }
  0x5c   : > { %p1234_p0 = pnand %p1233_p10, %p1229_p5 }
  0x5e   : > { %1237 = shalt.err (!%p1234_p0)
}
  0x5f   : > { %1085 = dma.hbm_to_vmem [thread:$0]  (!%p1458_p13), %s281_s10, 256, %s283_s24, %s270_s25  }
  0x60   : > { %291 = sbr.rel (%p1489_p2) target bundleno = 225 (0xe1), region = 36 }
  0x65   : > { %s1549_s6 = sand.u32 1, %s1351_s19  }
  0x66   : > { %s985_s15 = sshll.u32 %s1549_s6, 8  ;;  %s294_s20 = scalar_lea.sflag [#allocation3], %s1549_s6 }
  0x67   : > { %s1553_s27 = scalar_lea.vmem [#allocation2], %s985_s15 }
  0x68   : > { %1326 = dma.done.wait (%p1436_p6), %s294_s20, 4096  }
  0x69   : > { %1328 = vsyncadd (%p1436_p6), %s294_s20, 4294963200  ;;  %s303_s9 = sand.u32 1, %s1418_s22   ;;  %s1560_s21 = scalar_lea.vmem [#allocation5], %s985_s15 }
  0x6a   : > { %s304_s23 = scalar_lea.sflag [#allocation6], %s303_s9 }
  0x6b   : > { %1330 = dma.done.wait (%p1436_p6), %s304_s23, 4352  }
  0x6c   : > { %1332 = vsyncadd (%p1436_p6), %s304_s23, 4294962944  ;;  %s987_s8 = sshll.u32 %s1549_s6, 4  ;;  %s324_s13 = scalar_lea.sflag [#allocation9], %s1549_s6 }
  0x6d   : > { %s317_s12 = scalar_lea.vmem [#allocation7], %s987_s8  ;;  %s327_s10 = scalar_lea.vmem [#allocation8], %s987_s8 }
  0x6e   : > { %1334 = dma.done.wait (%p1436_p6), %s324_s13, 256  }
  0x6f   : > { %1336 = vsyncadd (%p1436_p6), %s324_s13, 4294967040  ;;  %v381_v0 = vld [vmem:[%s317_s12] sm:$0xff]  ;;  %v1620_v21 = vld [vmem:[%s317_s12 + $0x8] sm:$0xff]  ;;  %s989_s28 = sshll.u32 %s1549_s6, 5  ;;  %s1059_s24 = sshll.u32 %s1418_s22, 4 }
  0x70   : > { %v1572_v1 = vld [vmem:[%s327_s10] sm:$0xff]  ;;  %v1580_v4 = vperm.slane %v381_v0, 0  ;;  %v1588_v7 = vperm.slane %v381_v0, 1  ;;  %v1602_v13 = vperm.slane %v381_v0, 2  ;;  %v1612_v18 = vperm.slane %v381_v0, 3  ;;  %v1627_v25 = vld [vmem:[%s327_s10 + $0x8] sm:$0xff]  ;;  %s2066_s11 = scalar_lea.hbm %s2225_s4, %s1059_s24 }
  0x71   : > { %v1575_v2 = vld [vmem:[%s1553_s27] sm:$0xff]  ;;  %v1583_v5 = vperm.slane %v1572_v1, 0  ;;  %v1594_v9 = vperm.slane %v1572_v1, 1  ;;  %v1615_v19 = vperm.slane %v1572_v1, 2  ;;  %v1632_v27 = vperm.slane %v1572_v1, 3  ;;  %v1635_v28 = vld [vmem:[%s1553_s27 + $0x8] sm:$0xff] }
  0x72   : > { %v1578_v3 = vld [vmem:[%s1560_s21] sm:$0xff]  ;;  %v395_v10 = vmul.f32 %v1580_v4, %v1575_v2  ;;  %2316 = vst [vmem:[#allocation26_spill] sm:$0xff] %v1635_v28  ;;  %v1639_v31 = vperm.slane %v381_v0, 4  ;;  %v1642_v32 = vld [vmem:[%s1560_s21 + $0x8] sm:$0xff]  ;;  %v1645_v33 = vperm.slane %v1620_v21, 0  ;;  %v1659_v38 = vperm.slane %v1572_v1, 4 }
  0x73   : > { %v1586_v6 = vld [vmem:[%s1553_s27 + $0x20] sm:$0xff]  ;;  %v405_v11 = vmul.f32 %v1583_v5, %v1578_v3  ;;  %2317 = vst [vmem:[#allocation27_spill] sm:$0xff] %v1642_v32  ;;  %v1648_v34 = vld [vmem:[%s1553_s27 + $0x28] sm:$0xff]  ;;  %v1662_v39 = vperm.slane %v1627_v25, 0  ;;  %v1665_v40 = vperm.slane %v1620_v21, 1  ;;  %v1667_v42 = vperm.slane %v381_v0, 5 }
  0x74   : > { %v1591_v8 = vld [vmem:[%s1560_s21 + $0x20] sm:$0xff]  ;;  %v441_v12 = vmul.f32 %v1586_v6, %v1588_v7  ;;  %2318 = vst [vmem:[#allocation28_spill] sm:$0xff] %v1648_v34  ;;  %v1670_v43 = vperm.slane %v1572_v1, 5  ;;  %v396_v44 = vmul.f32 %v1645_v33, %v1635_v28  ;;  %v1675_v45 = vld [vmem:[%s1560_s21 + $0x28] sm:$0xff]  ;;  %v1688_v50 = vperm.slane %v1627_v25, 1  ;;  %v1844_v28 = vld [vmem:[%s1553_s27 + $0x38] sm:$0xff] }
  0x75   : > { %v1605_v14 = vld [vmem:[%s1553_s27 + $0x40] sm:$0xff]  ;;  %v409_v15 = vsub.f32 %v395_v10, %v405_v11  ;;  %v451_v16 = vmul.f32 %v1591_v8, %v1594_v9  ;;  %2321 = vst [vmem:[#allocation31_spill] sm:$0xff] %v1675_v45  ;;  %v406_v48 = vmul.f32 %v1662_v39, %v1642_v32  ;;  %v442_v49 = vmul.f32 %v1648_v34, %v1665_v40  ;;  %v1700_v56 = vld [vmem:[%s1553_s27 + $0x48] sm:$0xff]  ;;  %s1957_s16 = scalar_lea.vmem [#allocation10], %s989_s28  ;;  %s779_s30 = sshll.u32 %s2066_s11, 4  ;;  %s2097_s30 = int_to_ptr.hbm [resolvable:$true] %s779_s30 }
  0x76   : > { %v1610_v17 = vld [vmem:[%s1560_s21 + $0x40] sm:$0xff]  ;;  %v487_v23 = vmul.f32 %v1605_v14, %v1602_v13  ;;  %v1691_v51 = vperm.slane %v1620_v21, 2  ;;  %v1697_v55 = vperm.slane %v381_v0, 6  ;;  %2324 = vst [vmem:[#allocation34_spill] sm:$0xff] %v1700_v56  ;;  %v1709_v59 = vperm.slane %v1572_v1, 6  ;;  %s777_s1 = sshll.u32 %s1957_s16, 4  ;;  %s2081_s1 = int_to_ptr.vmem [resolvable:$true] %s777_s1 }
  0x77   : > { %2313 = vst [vmem:[#allocation23_spill] sm:$0xff] %v1610_v17  ;;  %v1618_v20 = vld [vmem:[%s1553_s27 + $0x60] sm:$0xff]  ;;  %v445_v22 = vadd.f32 %v441_v12, %v409_v15  ;;  %v497_v26 = vmul.f32 %v1610_v17, %v1615_v19  ;;  %v1711_v60 = vperm.slane %v381_v0, 7  ;;  %v410_v61 = vsub.f32 %v396_v44, %v406_v48  ;;  %v1751_v48 = vld [vmem:[%s1553_s27 + $0x68] sm:$0xff]  ;;  %s760_s17 = scalar_lea.sflag [#allocation4], %s1549_s6  ;;  %s1267_s14 = sshra.s32 %s2097_s30, 4  ;;  %s1268_s14 = int_to_ptr.hbm [resolvable:$true] %s1267_s14 }
  0x78   : > { %2314 = vst [vmem:[#allocation24_spill] sm:$0xff] %v1618_v20  ;;  %v1625_v24 = vld [vmem:[%s1560_s21 + $0x60] sm:$0xff]  ;;  %v533_v30 = vmul.f32 %v1618_v20, %v1612_v18  ;;  %v452_v62 = vmul.f32 %v1675_v45, %v1688_v50  ;;  %v1728_v0 = vperm.slane %v1572_v1, 7  ;;  %v1864_v17 = vld [vmem:[%s1553_s27 + $0xe8] sm:$0xff]  ;;  %s1269_s7 = scalar_lea.hbm %s1268_s14, 32  ;;  %p1274_p2 = scmp.lt.s32.totalorder %s1268_s14, %s2225_s4 }
  0x79   : > { %2315 = vst [vmem:[#allocation25_spill] sm:$0xff] %v1625_v24  ;;  %v455_v29 = vsub.f32 %v445_v22, %v451_v16  ;;  %v543_v35 = vmul.f32 %v1625_v24, %v1632_v27  ;;  %v1653_v36 = vld [vmem:[%s1553_s27 + $0x80] sm:$0xff]  ;;  %v1731_v16 = vld [vmem:[%s1560_s21 + $0x48] sm:$0xff]  ;;  %v446_v22 = vadd.f32 %v442_v49, %v410_v61  ;;  %v1754_v49 = vperm.slane %v1620_v21, 4  ;;  %p1270_p6 = scmp.ne.s32.totalorder %s1268_s14, %s1269_s7 }
  0x7a   : > { %2319 = vst [vmem:[#allocation29_spill] sm:$0xff] %v1653_v36  ;;  %v1656_v37 = vld [vmem:[%s1560_s21 + $0x80] sm:$0xff]  ;;  %v579_v53 = vmul.f32 %v1653_v36, %v1639_v31 }
  0x7b   : > { %2320 = vst [vmem:[#allocation30_spill] sm:$0xff] %v1656_v37  ;;  %v491_v41 = vadd.f32 %v487_v23, %v455_v29  ;;  %v1678_v46 = vld [vmem:[%s1553_s27 + $0xa0] sm:$0xff]  ;;  %v589_v54 = vmul.f32 %v1656_v37, %v1659_v38  ;;  %v488_v23 = vmul.f32 %v1700_v56, %v1691_v51  ;;  %v1739_v29 = vperm.slane %v1620_v21, 3  ;;  %v1782_v56 = vld [vmem:[%s1560_s21 + $0x88] sm:$0xff]  ;;  %p1271_p13 = pnand %p1270_p6, %p1443_p11 }
  0x7c   : > { %2322 = vst [vmem:[#allocation32_spill] sm:$0xff] %v1678_v46  ;;  %v1681_v47 = vld [vmem:[%s1560_s21 + $0xa0] sm:$0xff]  ;;  %v625_v10 = vmul.f32 %v1678_v46, %v1667_v42  ;;  %v1776_v46 = vld [vmem:[%s1553_s27 + $0x30] sm:$0xff] }
  0x7d   : > { %2323 = vst [vmem:[#allocation33_spill] sm:$0xff] %v1681_v47  ;;  %v501_v52 = vsub.f32 %v491_v41, %v497_v26  ;;  %v1703_v57 = vld [vmem:[%s1553_s27 + $0xc0] sm:$0xff]  ;;  %v1719_v11 = vmul.f32 %v1681_v47, %v1670_v43  ;;  %v1736_v26 = vperm.slane %v1627_v25, 2  ;;  %v1773_v47 = vld [vmem:[%s1553_s27 + $0x88] sm:$0xff]  ;;  %v534_v36 = vmul.f32 %v1751_v48, %v1739_v29  ;;  %p1272_p1 = pneg %p1271_p13 }
  0x7e   : > { %2325 = vst [vmem:[#allocation35_spill] sm:$0xff] %v1703_v57  ;;  %v1706_v58 = vld [vmem:[%s1560_s21 + $0xc0] sm:$0xff]  ;;  %v671_v41 = vmul.f32 %v1703_v57, %v1697_v55  ;;  %v1770_v57 = vld [vmem:[%s1560_s21 + $0x68] sm:$0xff] }
  0x7f   : > { %2326 = vst [vmem:[#allocation36_spill] sm:$0xff] %v1706_v58  ;;  %v537_v63 = vadd.f32 %v533_v30, %v501_v52  ;;  %v1722_v12 = vld [vmem:[%s1553_s27 + $0xe0] sm:$0xff]  ;;  %v1742_v30 = vld [vmem:[%s1553_s27 + $0x10] sm:$0xff]  ;;  %v1748_v44 = vmul.f32 %v1706_v58, %v1709_v59  ;;  %v498_v58 = vmul.f32 %v1731_v16, %v1736_v26 }
  0x80   : > { %2327 = vst [vmem:[#allocation37_spill] sm:$0xff] %v1722_v12  ;;  %v1725_v15 = vld [vmem:[%s1560_s21 + $0xe0] sm:$0xff]  ;;  %v1757_v52 = vld [vmem:[%s1560_s21 + $0x10] sm:$0xff]  ;;  %v1761_v61 = vmul.f32 %v1722_v12, %v1711_v60  ;;  %v1779_v12 = vperm.slane %v1627_v25, 3 }
  0x81   : > { %2328 = vst [vmem:[#allocation38_spill] sm:$0xff] %v1725_v15  ;;  %v547_v1 = vsub.f32 %v537_v63, %v543_v35  ;;  %v1765_v35 = vmul.f32 %v1725_v15, %v1728_v0  ;;  %v456_v63 = vsub.f32 %v446_v22, %v452_v62  ;;  %v1785_v15 = vperm.slane %v1620_v21, 5  ;;  %v1790_v22 = vld [vmem:[%s1560_s21 + $0x30] sm:$0xff] }
  0x82   : > { %2329 = vst [vmem:[#allocation39_spill] sm:$0xff] %v1731_v16  ;;  %v397_v62 = vmul.f32 %v1580_v4, %v1742_v30  ;;  %v407_v45 = vmul.f32 %v1583_v5, %v1757_v52 }
  0x83   : > { %2330 = vst [vmem:[#allocation40_spill] sm:$0xff] %v1742_v30  ;;  %v583_v37 = vadd.f32 %v579_v53, %v547_v1  ;;  %v492_v16 = vadd.f32 %v488_v23, %v456_v63  ;;  %v1795_v53 = vperm.slane %v1627_v25, 4  ;;  %v1798_v1 = vld [vmem:[%s1553_s27 + $0xa8] sm:$0xff]  ;;  %v544_v30 = vmul.f32 %v1770_v57, %v1779_v12 }
  0x84   : > { %2331 = vst [vmem:[#allocation41_spill] sm:$0xff] %v1751_v48  ;;  %v580_v23 = vmul.f32 %v1773_v47, %v1754_v49  ;;  %v443_v63 = vmul.f32 %v1776_v46, %v1588_v7  ;;  %v1809_v48 = vld [vmem:[%s1553_s27 + $0x50] sm:$0xff] }
  0x85   : > { %2332 = vst [vmem:[#allocation42_spill] sm:$0xff] %v1757_v52  ;;  %v593_v34 = vsub.f32 %v583_v37, %v589_v54  ;;  %v502_v24 = vsub.f32 %v492_v16, %v498_v58  ;;  %v590_v32 = vmul.f32 %v1782_v56, %v1795_v53  ;;  %v1814_v52 = vld [vmem:[%s1560_s21 + $0xa8] sm:$0xff]  ;;  %v411_v37 = vsub.f32 %v397_v62, %v407_v45  ;;  %v1827_v16 = vld [vmem:[%s1560_s21 + $0x50] sm:$0xff] }
  0x86   : > { %2333 = vst [vmem:[#allocation43_spill] sm:$0xff] %v1770_v57  ;;  %v453_v54 = vmul.f32 %v1790_v22, %v1594_v9  ;;  %v1824_v58 = vperm.slane %v1620_v21, 6  ;;  %v1833_v62 = vld [vmem:[%s1553_s27 + $0xc8] sm:$0xff] }
  0x87   : > { %2334 = vst [vmem:[#allocation44_spill] sm:$0xff] %v1773_v47  ;;  %v629_v57 = vadd.f32 %v625_v10, %v593_v34  ;;  %v626_v47 = vmul.f32 %v1798_v1, %v1785_v15  ;;  %v538_v45 = vadd.f32 %v534_v36, %v502_v24  ;;  %v1836_v34 = vperm.slane %v1627_v25, 6  ;;  %v1852_v36 = vld [vmem:[%s1560_s21 + $0xc8] sm:$0xff] }
  0x88   : > { %2335 = vst [vmem:[#allocation45_spill] sm:$0xff] %v1776_v46  ;;  %v1821_v46 = vperm.slane %v1627_v25, 5  ;;  %v447_v10 = vadd.f32 %v443_v63, %v411_v37  ;;  %v1858_v63 = vperm.slane %v1627_v25, 7  ;;  %v1861_v37 = vld [vmem:[%s1553_s27 + $0x70] sm:$0xff] }
  0x89   : > { %2336 = vst [vmem:[#allocation46_spill] sm:$0xff] %v1782_v56  ;;  %v1830_v56 = vld [vmem:[%s1553_s27 + $0x18] sm:$0xff]  ;;  %v639_v20 = vsub.f32 %v629_v57, %v1719_v11  ;;  %v499_v11 = vmul.f32 %v1827_v16, %v1615_v19 }
  0x8a   : > { %2337 = vst [vmem:[#allocation47_spill] sm:$0xff] %v1785_v15  ;;  %v1849_v24 = vmul.f32 %v1814_v52, %v1821_v46  ;;  %v1855_v15 = vperm.slane %v1620_v21, 7  ;;  %v457_v57 = vsub.f32 %v447_v10, %v453_v54  ;;  %v1871_v21 = vld [vmem:[%s1560_s21 + $0x38] sm:$0xff]  ;;  %v444_v10 = vmul.f32 %v1844_v28, %v1665_v40 }
  0x8b   : > { %2338 = vst [vmem:[#allocation48_spill] sm:$0xff] %v1790_v22  ;;  %v1841_v22 = vld [vmem:[%s1560_s21 + $0x18] sm:$0xff]  ;;  %v675_v25 = vadd.f32 %v671_v41, %v639_v20  ;;  %v535_v41 = vmul.f32 %v1861_v37, %v1612_v18 }
  0x8c   : > { %2339 = vst [vmem:[#allocation49_spill] sm:$0xff] %v1798_v1  ;;  %v489_v1 = vmul.f32 %v1809_v48, %v1602_v13  ;;  %v408_v54 = vmul.f32 %v1662_v39, %v1841_v22 }
  0x8d   : > { %2340 = vst [vmem:[#allocation50_spill] sm:$0xff] %v1809_v48  ;;  %v548_v48 = vsub.f32 %v538_v45, %v544_v30  ;;  %v672_v30 = vmul.f32 %v1833_v62, %v1824_v58  ;;  %v1876_v45 = vld [vmem:[%s1560_s21 + $0xe8] sm:$0xff] }
  0x8e   : > { %2341 = vst [vmem:[#allocation51_spill] sm:$0xff] %v1814_v52  ;;  %v398_v52 = vmul.f32 %v1645_v33, %v1830_v56  ;;  %v493_v20 = vadd.f32 %v489_v1, %v457_v57  ;;  %v454_v1 = vmul.f32 %v1871_v21, %v1688_v50 }
  0x8f   : > { %2342 = vst [vmem:[#allocation52_spill] sm:$0xff] %v1821_v46  ;;  %v1879_v46 = vld [vmem:[%s1560_s21 + $0x70] sm:$0xff] }
  0x90   : > { %2343 = vst [vmem:[#allocation53_spill] sm:$0xff] %v1824_v58  ;;  %v1895_v58 = vld [vmem:[%s1553_s27 + $0x58] sm:$0xff] }
  0x91   : > { %2344 = vst [vmem:[#allocation54_spill] sm:$0xff] %v1827_v16  ;;  %v584_v16 = vadd.f32 %v580_v23, %v548_v48  ;;  %v718_v48 = vmul.f32 %v1864_v17, %v1855_v15  ;;  %v1902_v23 = vld [vmem:[%s1560_s21 + $0x90] sm:$0xff] }
  0x92   : > { %2345 = vst [vmem:[#allocation55_spill] sm:$0xff] %v1830_v56  ;;  %v1887_v56 = vmul.f32 %v1852_v36, %v1836_v34 }
  0x93   : > { %2346 = vst [vmem:[#allocation56_spill] sm:$0xff] %v1833_v62  ;;  %v1892_v62 = vld [vmem:[%s1553_s27 + $0x90] sm:$0xff]  ;;  %v594_v57 = vsub.f32 %v584_v16, %v590_v32  ;;  %v490_v16 = vmul.f32 %v1895_v58, %v1691_v51 }
  0x94   : > { %2347 = vst [vmem:[#allocation57_spill] sm:$0xff] %v1836_v34  ;;  %v503_v34 = vsub.f32 %v493_v20, %v499_v11 }
  0x95   : > { %2348 = vst [vmem:[#allocation58_spill] sm:$0xff] %v1841_v22  ;;  %v685_v22 = vsub.f32 %v675_v25, %v1748_v44  ;;  %v545_v44 = vmul.f32 %v1879_v46, %v1632_v27  ;;  %v1916_v25 = vld [vmem:[%s1560_s21 + $0xb0] sm:$0xff]  ;;  %v630_v11 = vadd.f32 %v626_v47, %v594_v57 }
  0x96   : > { %2349 = vst [vmem:[#allocation59_spill] sm:$0xff] %v1844_v28  ;;  %v412_v28 = vsub.f32 %v398_v52, %v408_v54  ;;  %v581_v54 = vmul.f32 %v1892_v62, %v1639_v31  ;;  %v539_v20 = vadd.f32 %v535_v41, %v503_v34  ;;  %v1943_v57 = vld [vmem:[%s1560_s21 + $0xd0] sm:$0xff] }
  0x97   : > { %2350 = vst [vmem:[#allocation60_spill] sm:$0xff] %v1852_v36  ;;  %v1905_v36 = vld [vmem:[%s1553_s27 + $0xb0] sm:$0xff]  ;;  %v721_v52 = vadd.f32 %v1761_v61, %v685_v22  ;;  %v1934_v22 = vld [vmem:[%s1553_s27 + $0x78] sm:$0xff]  ;;  %v640_v34 = vsub.f32 %v630_v11, %v1849_v24 }
  0x98   : > { %2351 = vst [vmem:[#allocation61_spill] sm:$0xff] %v1861_v37  ;;  %v1911_v37 = vmul.f32 %v1876_v45, %v1858_v63  ;;  %v448_v32 = vadd.f32 %v444_v10, %v412_v28  ;;  %v1931_v61 = vld [vmem:[%s1553_s27 + $0xd0] sm:$0xff]  ;;  %v637_v28 = vmul.f32 %v1916_v25, %v1670_v43  ;;  %v549_v41 = vsub.f32 %v539_v20, %v545_v44 }
  0x99   : > { %2352 = vst [vmem:[#allocation62_spill] sm:$0xff] %v1864_v17  ;;  %v1919_v17 = vld [vmem:[%s1560_s21 + $0x58] sm:$0xff]  ;;  %v673_v24 = vmul.f32 %v1931_v61, %v1697_v55  ;;  %v1967_v20 = vld [vmem:[%s1560_s21 + $0xf0] sm:$0xff] }
  0x9a   : > { %2353 = vst [vmem:[#allocation63_spill] sm:$0xff] %v1871_v21  ;;  %v627_v21 = vmul.f32 %v1905_v36, %v1667_v42  ;;  %v458_v10 = vsub.f32 %v448_v32, %v454_v1  ;;  %v500_v47 = vmul.f32 %v1919_v17, %v1736_v26  ;;  %v421_v1 = vmul.f32 %v1580_v4, %v1578_v3  ;;  %v1970_v3 = vld [vmem:[%s1553_s27 + $0x98] sm:$0xff] }
  0x9b   : > { %2354 = vst [vmem:[#allocation64_spill] sm:$0xff] %v1876_v45  ;;  %v591_v45 = vmul.f32 %v1902_v23, %v1659_v38  ;;  %v459_v32 = vmul.f32 %v1586_v6, %v1594_v9  ;;  %v585_v11 = vadd.f32 %v581_v54, %v549_v41  ;;  %v1985_v41 = vld [vmem:[%s1553_s27 + $0xb8] sm:$0xff] }
  0x9c   : > { %2355 = vst [vmem:[#allocation65_spill] sm:$0xff] %v1892_v62  ;;  %v731_v62 = vsub.f32 %v721_v52, %v1765_v35  ;;  %v413_v35 = vmul.f32 %v1583_v5, %v1575_v2  ;;  %v494_v44 = vadd.f32 %v490_v16, %v458_v10  ;;  %v536_v52 = vmul.f32 %v1934_v22, %v1739_v29 }
  0x9d   : > { %2356 = vst [vmem:[#allocation66_spill] sm:$0xff] %v1895_v58  ;;  %v676_v2 = vadd.f32 %v672_v30, %v640_v34  ;;  %v683_v16 = vmul.f32 %v1943_v57, %v1709_v59  ;;  %v595_v34 = vsub.f32 %v585_v11, %v591_v45  ;;  %v2371_v11 = vld [vmem:[#allocation23_spill] sm:$0xff] }
  0x9e   : > { %2357 = vst [vmem:[#allocation67_spill] sm:$0xff] %v1902_v23  ;;  %v1949_v23 = vld [vmem:[%s1560_s21 + $0x78] sm:$0xff]  ;;  %v504_v6 = vsub.f32 %v494_v44, %v500_v47  ;;  %v582_v47 = vmul.f32 %v1970_v3, %v1754_v49 }
  0x9f   : > { %2358 = vst [vmem:[#allocation68_spill] sm:$0xff] %v1905_v36  ;;  %v1946_v36 = vld [vmem:[%s1553_s27 + $0xf0] sm:$0xff]  ;;  %v546_v30 = vmul.f32 %v1949_v23, %v1779_v12  ;;  %v686_v54 = vsub.f32 %v676_v2, %v1887_v56  ;;  %v631_v45 = vadd.f32 %v627_v21, %v595_v34  ;;  %v1996_v2 = vld [vmem:[%s1560_s21 + $0xb8] sm:$0xff] }
  0xa0   : > { %2359 = vst [vmem:[#allocation69_spill] sm:$0xff] %v1916_v25  ;;  %v1973_v25 = vld [vmem:[%s1560_s21 + $0x98] sm:$0xff]  ;;  %v719_v10 = vmul.f32 %v1946_v36, %v1711_v60 }
  0xa1   : > { %2360 = vst [vmem:[#allocation70_spill] sm:$0xff] %v1919_v17  ;;  %v592_v44 = vmul.f32 %v1973_v25, %v1795_v53  ;;  %v722_v56 = vadd.f32 %v718_v48, %v686_v54  ;;  %v641_v54 = vsub.f32 %v631_v45, %v637_v28  ;;  %v2011_v34 = vld [vmem:[%s1560_s21 + $0xd8] sm:$0xff] }
  0xa2   : > { %2361 = vst [vmem:[#allocation71_spill] sm:$0xff] %v1931_v61  ;;  %v467_v61 = vmul.f32 %v1591_v8, %v1588_v7  ;;  %v505_v8 = vmul.f32 %v1605_v14, %v1615_v19  ;;  %v513_v14 = vmul.f32 %v2371_v11, %v1602_v13  ;;  %v2023_v28 = vld [vmem:[%s1553_s27 + $0xf8] sm:$0xff] }
  0xa3   : > { %2362 = vst [vmem:[#allocation72_spill] sm:$0xff] %v1934_v22  ;;  %v732_v21 = vsub.f32 %v722_v56, %v1911_v37  ;;  %v677_v37 = vadd.f32 %v673_v24, %v641_v54  ;;  %v2026_v56 = vld [vmem:[%s1560_s21 + $0xf8] sm:$0xff] }
  0xa4   : > { %2363 = vst [vmem:[#allocation73_spill] sm:$0xff] %v1943_v57  ;;  %v540_v57 = vadd.f32 %v536_v52, %v504_v6  ;;  %v2373_v6 = vld [vmem:[#allocation24_spill] sm:$0xff] }
  0xa5   : > { %2364 = vst [vmem:[#allocation74_spill] sm:$0xff] %v1946_v36  ;;  %v2372_v36 = vld [vmem:[#allocation47_spill] sm:$0xff]  ;;  %v687_v54 = vsub.f32 %v677_v37, %v683_v16 }
  0xa6   : > { %2365 = vst [vmem:[#allocation75_spill] sm:$0xff] %v1949_v23  ;;  %v628_v52 = vmul.f32 %v1985_v41, %v2372_v36 }
  0xa7   : > { %751 = vst [vmem:[%s1957_s16] sm:$0xff] %v731_v62  ;;  %v425_v62 = vadd.f32 %v421_v1, %v413_v35  ;;  %v729_v1 = vmul.f32 %v1967_v20, %v1728_v0 }
  0xa8   : > { %2366 = vst [vmem:[#allocation76_spill] sm:$0xff] %v1967_v20  ;;  %v551_v20 = vmul.f32 %v2373_v6, %v1632_v27  ;;  %v2379_v6 = vld [vmem:[#allocation25_spill] sm:$0xff] }
  0xa9   : > { %2367 = vst [vmem:[#allocation77_spill] sm:$0xff] %v1970_v3  ;;  %v463_v35 = vadd.f32 %v459_v32, %v425_v62  ;;  %v550_v62 = vsub.f32 %v540_v57, %v546_v30  ;;  %v2374_v3 = vld [vmem:[#allocation26_spill] sm:$0xff]  ;;  %v2377_v57 = vld [vmem:[#allocation27_spill] sm:$0xff]  ;;  %v559_v23 = vmul.f32 %v2379_v6, %v1612_v18  ;;  %v2384_v6 = vld [vmem:[#allocation57_spill] sm:$0xff] }
  0xaa   : > { %2368 = vst [vmem:[#allocation78_spill] sm:$0xff] %v1973_v25  ;;  %v414_v48 = vmul.f32 %v1662_v39, %v2374_v3  ;;  %v422_v30 = vmul.f32 %v1645_v33, %v2377_v57  ;;  %v2380_v3 = vld [vmem:[#allocation28_spill] sm:$0xff]  ;;  %v2383_v57 = vld [vmem:[#allocation53_spill] sm:$0xff]  ;;  %v684_v17 = vmul.f32 %v2011_v34, %v2384_v6 }
  0xab   : > { %2369 = vst [vmem:[#allocation79_spill] sm:$0xff] %v1985_v41  ;;  %v471_v32 = vadd.f32 %v467_v61, %v463_v35  ;;  %v2008_v61 = vld [vmem:[%s1553_s27 + $0xd8] sm:$0xff]  ;;  %v586_v11 = vadd.f32 %v582_v47, %v550_v62  ;;  %v2378_v41 = vld [vmem:[#allocation52_spill] sm:$0xff]  ;;  %v460_v22 = vmul.f32 %v2380_v3, %v1688_v50  ;;  %s1273_s27 = scalar_lea.hbm %s2225_s4, 64 }
  0xac   : > { %2370 = vst [vmem:[#allocation80_spill] sm:$0xff] %v1996_v2  ;;  %v638_v25 = vmul.f32 %v1996_v2, %v2378_v41  ;;  %v426_v45 = vadd.f32 %v422_v30, %v414_v48  ;;  %v674_v2 = vmul.f32 %v2008_v61, %v2383_v57  ;;  %v730_v30 = vmul.f32 %v2026_v56, %v1858_v63  ;;  %p1275_p3 = scmp.lt.s32.totalorder %s1273_s27, %s1269_s7 }
  0xad   : > { %2375 = vst [vmem:[#allocation23_spill] sm:$0xff] %v2008_v61  ;;  %v509_v35 = vadd.f32 %v505_v8, %v471_v32  ;;  %v2382_v32 = vld [vmem:[#allocation31_spill] sm:$0xff]  ;;  %v596_v62 = vsub.f32 %v586_v11, %v592_v44  ;;  %v720_v44 = vmul.f32 %v2023_v28, %v1855_v15  ;;  %v2387_v11 = vld [vmem:[#allocation30_spill] sm:$0xff] }
  0xae   : > { %2376 = vst [vmem:[#allocation47_spill] sm:$0xff] %v2011_v34  ;;  %v468_v47 = vmul.f32 %v2382_v32, %v1665_v40  ;;  %v464_v58 = vadd.f32 %v460_v22, %v426_v45  ;;  %v605_v32 = vmul.f32 %v2387_v11, %v1639_v31  ;;  %v723_v34 = vadd.f32 %v719_v10, %v687_v54  ;;  %v2393_v11 = vld [vmem:[#allocation33_spill] sm:$0xff]  ;;  %p1276_p4 = por %p1275_p3, %p1274_p2 }
  0xaf   : > { %752 = vst [vmem:[%s1957_s16 + $0x8] sm:$0xff] %v732_v21  ;;  %v517_v8 = vadd.f32 %v513_v14, %v509_v35  ;;  %v2385_v21 = vld [vmem:[#allocation29_spill] sm:$0xff]  ;;  %v2386_v14 = vld [vmem:[#allocation34_spill] sm:$0xff]  ;;  %v632_v35 = vadd.f32 %v628_v52, %v596_v62  ;;  %v2389_v52 = vld [vmem:[#allocation32_spill] sm:$0xff] }
  0xb0   : > { %2381 = vst [vmem:[#allocation24_spill] sm:$0xff] %v2026_v56  ;;  %v597_v24 = vmul.f32 %v2385_v21, %v1659_v38  ;;  %v506_v48 = vmul.f32 %v2386_v14, %v1736_v26  ;;  %v472_v21 = vadd.f32 %v468_v47, %v464_v58  ;;  %v643_v37 = vmul.f32 %v2389_v52, %v1670_v43  ;;  %v2391_v62 = vld [vmem:[#allocation40_spill] sm:$0xff]  ;;  %v2392_v58 = vld [vmem:[#allocation42_spill] sm:$0xff]  ;;  %v2395_v52 = vld [vmem:[#allocation45_spill] sm:$0xff]  ;;  %p1277_p5 = pnand %p1276_p4, %p1272_p1 }
  0xb1   : > { %v555_v3 = vadd.f32 %v551_v20, %v517_v8  ;;  %v2388_v20 = vld [vmem:[#allocation39_spill] sm:$0xff]  ;;  %v642_v16 = vsub.f32 %v632_v35, %v638_v25  ;;  %v2390_v8 = vld [vmem:[#allocation41_spill] sm:$0xff]  ;;  %v415_v14 = vmul.f32 %v1583_v5, %v2391_v62  ;;  %v733_v10 = vsub.f32 %v723_v34, %v729_v1 }
  0xb2   : > { %v514_v22 = vmul.f32 %v2388_v20, %v1691_v51  ;;  %v552_v45 = vmul.f32 %v2390_v8, %v1779_v12  ;;  %v510_v54 = vadd.f32 %v506_v48, %v472_v21  ;;  %v423_v47 = vmul.f32 %v1580_v4, %v2392_v58  ;;  %v2394_v25 = vld [vmem:[#allocation43_spill] sm:$0xff] }
  0xb3   : > { %v563_v61 = vadd.f32 %v559_v23, %v555_v3  ;;  %v678_v3 = vadd.f32 %v674_v2, %v642_v16  ;;  %v651_v20 = vmul.f32 %v2393_v11, %v1667_v42  ;;  %v560_v35 = vmul.f32 %v2394_v25, %v1739_v29  ;;  %753 = vst [vmem:[%s1957_s16 + $0x10] sm:$0xff] %v733_v10  ;;  %v2396_v2 = vld [vmem:[#allocation48_spill] sm:$0xff]  ;;  %v2402_v10 = vld [vmem:[#allocation38_spill] sm:$0xff] }
  0xb4   : > { %v461_v56 = vmul.f32 %v2395_v52, %v1594_v9  ;;  %v518_v5 = vadd.f32 %v514_v22, %v510_v54  ;;  %v427_v1 = vadd.f32 %v423_v47, %v415_v14  ;;  %v2398_v9 = vld [vmem:[#allocation36_spill] sm:$0xff]  ;;  %v2403_v54 = vld [vmem:[#allocation46_spill] sm:$0xff]  ;;  %v2405_v52 = vld [vmem:[#allocation49_spill] sm:$0xff] }
  0xb5   : > { %v601_v23 = vadd.f32 %v597_v24, %v563_v61  ;;  %v469_v61 = vmul.f32 %v2396_v2, %v1588_v7  ;;  %v688_v34 = vsub.f32 %v678_v3, %v684_v17  ;;  %v2397_v24 = vld [vmem:[#allocation35_spill] sm:$0xff]  ;;  %v697_v21 = vmul.f32 %v2398_v9, %v1697_v55  ;;  %v2399_v16 = vld [vmem:[#allocation44_spill] sm:$0xff]  ;;  %v2401_v17 = vld [vmem:[#allocation37_spill] sm:$0xff] }
  0xb6   : > { %v689_v48 = vmul.f32 %v2397_v24, %v1709_v59  ;;  %v598_v8 = vmul.f32 %v2399_v16, %v1795_v53  ;;  %v556_v58 = vadd.f32 %v552_v45, %v518_v5  ;;  %v465_v11 = vadd.f32 %v461_v56, %v427_v1  ;;  %v2404_v3 = vld [vmem:[#allocation54_spill] sm:$0xff]  ;;  %v2407_v1 = vld [vmem:[#allocation55_spill] sm:$0xff] }
  0xb7   : > { %v609_v4 = vadd.f32 %v605_v32, %v601_v23  ;;  %v2400_v32 = vld [vmem:[#allocation50_spill] sm:$0xff]  ;;  %v724_v7 = vadd.f32 %v720_v44, %v688_v34  ;;  %v735_v14 = vmul.f32 %v2401_v17, %v1728_v0  ;;  %v743_v23 = vmul.f32 %v2402_v10, %v1711_v60  ;;  %v2410_v9 = vld [vmem:[#allocation59_spill] sm:$0xff] }
  0xb8   : > { %v507_v22 = vmul.f32 %v2400_v32, %v1615_v19  ;;  %v606_v47 = vmul.f32 %v2403_v54, %v1754_v49  ;;  %v564_v45 = vadd.f32 %v560_v35, %v556_v58  ;;  %v473_v56 = vadd.f32 %v469_v61, %v465_v11  ;;  %v2408_v34 = vld [vmem:[#allocation58_spill] sm:$0xff]  ;;  %v2411_v16 = vld [vmem:[#allocation63_spill] sm:$0xff] }
  0xb9   : > { %v647_v62 = vadd.f32 %v643_v37, %v609_v4  ;;  %v515_v19 = vmul.f32 %v2404_v3, %v1602_v13  ;;  %v734_v25 = vsub.f32 %v724_v7, %v730_v30  ;;  %v644_v44 = vmul.f32 %v2405_v52, %v2378_v41  ;;  %v2406_v4 = vld [vmem:[#allocation61_spill] sm:$0xff]  ;;  %v2409_v30 = vld [vmem:[#allocation51_spill] sm:$0xff] }
  0xba   : > { %v553_v5 = vmul.f32 %v2406_v4, %v1632_v27  ;;  %v416_v2 = vmul.f32 %v1662_v39, %v2407_v1  ;;  %v602_v35 = vadd.f32 %v598_v8, %v564_v45  ;;  %v511_v61 = vadd.f32 %v507_v22, %v473_v56 }
  0xbb   : > { %v655_v37 = vadd.f32 %v651_v20, %v647_v62  ;;  %v424_v13 = vmul.f32 %v1645_v33, %v2408_v34  ;;  %754 = vst [vmem:[%s1957_s16 + $0x18] sm:$0xff] %v734_v25  ;;  %v652_v24 = vmul.f32 %v2409_v30, %v2372_v36  ;;  %v561_v27 = vmul.f32 %v1879_v46, %v1612_v18 }
  0xbc   : > { %v462_v39 = vmul.f32 %v2410_v9, %v1688_v50  ;;  %v470_v62 = vmul.f32 %v2411_v16, %v1665_v40  ;;  %v610_v8 = vadd.f32 %v606_v47, %v602_v35  ;;  %v519_v58 = vadd.f32 %v515_v19, %v511_v61 }
  0xbd   : > { %v693_v20 = vadd.f32 %v689_v48, %v655_v37  ;;  %v428_v11 = vadd.f32 %v424_v13, %v416_v2 }
  0xbf   : > { %v701_v48 = vadd.f32 %v697_v21, %v693_v20 }
  0xc0   : > { %1280 = shalt.err (!%p1277_p5)
}
  0xc1   : > { %s1364_s21 = smov 256   ;;  %s1365_s8 = smov 512   ;;  %v2412_v18 = vld [vmem:[#allocation56_spill] sm:$0xff]  ;;  %v2413_v40 = vld [vmem:[#allocation65_spill] sm:$0xff]  ;;  %v2414_v50 = vld [vmem:[#allocation66_spill] sm:$0xff]  ;;  %v739_v32 = vadd.f32 %v735_v14, %v701_v48  ;;  %v648_v22 = vadd.f32 %v644_v44, %v610_v8  ;;  %v557_v7 = vadd.f32 %v553_v5, %v519_v58  ;;  %v466_v17 = vadd.f32 %v462_v39, %v428_v11 }
  0xc2   : > { %s1366_s12 = smov 16   ;;  %v690_v33 = vmul.f32 %v2412_v18, %v2384_v6  ;;  %v599_v46 = vmul.f32 %v2413_v40, %v1659_v38  ;;  %v508_v21 = vmul.f32 %v2414_v50, %v1736_v26  ;;  %v2415_v10 = vld [vmem:[#allocation60_spill] sm:$0xff]  ;;  %v2416_v47 = vld [vmem:[#allocation67_spill] sm:$0xff]  ;;  %v2417_v45 = vld [vmem:[#allocation70_spill] sm:$0xff]  ;;  %s2145_s13 = scalar_lea.vmem [#allocation11], %s989_s28 }
  0xc3   : > { %1069 = dma.vmem_to_hbm [thread:$0]  (%p1443_p11), %s2081_s1, 512, %s2097_s30, %s760_s17, %s1364_s21, %s1365_s8, %s1366_s12   ;;  %v698_v54 = vmul.f32 %v2415_v10, %v2383_v57  ;;  %v607_v37 = vmul.f32 %v2416_v47, %v1639_v31  ;;  %v516_v56 = vmul.f32 %v2417_v45, %v1691_v51  ;;  %v747_v3 = vadd.f32 %v743_v23, %v739_v32  ;;  %v2418_v52 = vld [vmem:[#allocation62_spill] sm:$0xff]  ;;  %v2419_v14 = vld [vmem:[#allocation68_spill] sm:$0xff]  ;;  %v2422_v20 = vld [vmem:[#allocation69_spill] sm:$0xff] }
  0xc4   : > { %v656_v19 = vadd.f32 %v652_v24, %v648_v22  ;;  %v565_v25 = vadd.f32 %v561_v27, %v557_v7  ;;  %v474_v38 = vadd.f32 %v470_v62, %v466_v17  ;;  %v736_v26 = vmul.f32 %v2418_v52, %v1858_v63  ;;  %v2420_v51 = vld [vmem:[#allocation72_spill] sm:$0xff]  ;;  %v2423_v13 = vld [vmem:[#allocation75_spill] sm:$0xff]  ;;  %v2426_v48 = vld [vmem:[#allocation73_spill] sm:$0xff]  ;;  %s793_s16 = scalar_lea.hbm %s2226_s5, %s1059_s24  ;;  %s794_s25 = sshll.u32 %s2145_s13, 4  ;;  %s795_s25 = int_to_ptr.vmem [resolvable:$true] %s794_s25 }
  0xc5   : > { %v645_v44 = vmul.f32 %v2419_v14, %v1670_v43  ;;  %755 = vst [vmem:[%s2145_s13] sm:$0xff] %v747_v3  ;;  %v554_v23 = vmul.f32 %v2420_v51, %v1779_v12  ;;  %v2421_v1 = vld [vmem:[#allocation64_spill] sm:$0xff]  ;;  %v653_v35 = vmul.f32 %v2422_v20, %v1667_v42  ;;  %v562_v30 = vmul.f32 %v2423_v13, %v1739_v29  ;;  %v2424_v24 = vld [vmem:[#allocation71_spill] sm:$0xff]  ;;  %v2425_v12 = vld [vmem:[#allocation77_spill] sm:$0xff]  ;;  %s796_s26 = sshll.u32 %s793_s16, 4  ;;  %s765_s11 = scalar_lea.sflag [#allocation12], %s1549_s6  ;;  %s797_s26 = int_to_ptr.hbm [resolvable:$true] %s796_s26 }
  0xc6   : > { %v694_v4 = vadd.f32 %v690_v33, %v656_v19  ;;  %v603_v31 = vadd.f32 %v599_v46, %v565_v25  ;;  %v512_v5 = vadd.f32 %v508_v21, %v474_v38  ;;  %v744_v2 = vmul.f32 %v2421_v1, %v1855_v15  ;;  %v2427_v18 = vld [vmem:[#allocation78_spill] sm:$0xff]  ;;  %v2429_v50 = vld [vmem:[#allocation79_spill] sm:$0xff]  ;;  %v2431_v7 = vld [vmem:[#allocation80_spill] sm:$0xff]  ;;  %s1295_s1 = sshra.s32 %s797_s26, 4  ;;  %s1301_s17 = scalar_lea.hbm %s2226_s5, 64  ;;  %s1296_s1 = int_to_ptr.hbm [resolvable:$true] %s1295_s1 }
  0xc7   : > { %v691_v27 = vmul.f32 %v2424_v24, %v1709_v59  ;;  %v600_v62 = vmul.f32 %v2425_v12, %v1795_v53  ;;  %v699_v8 = vmul.f32 %v2426_v48, %v1697_v55  ;;  %v608_v33 = vmul.f32 %v2427_v18, %v1754_v49  ;;  %v2428_v59 = vld [vmem:[#allocation74_spill] sm:$0xff]  ;;  %v2430_v55 = vld [vmem:[#allocation76_spill] sm:$0xff]  ;;  %v2433_v45 = vld [vmem:[#allocation47_spill] sm:$0xff]  ;;  %s1297_s22 = scalar_lea.hbm %s1296_s1, 32  ;;  %p1302_p0 = scmp.lt.s32.totalorder %s1296_s1, %s2226_s5 }
  0xc8   : > { %v702_v61 = vadd.f32 %v698_v54, %v694_v4  ;;  %v611_v43 = vadd.f32 %v607_v37, %v603_v31  ;;  %v520_v34 = vadd.f32 %v516_v56, %v512_v5  ;;  %v737_v40 = vmul.f32 %v2428_v59, %v1728_v0  ;;  %v2432_v54 = vld [vmem:[#allocation23_spill] sm:$0xff]  ;;  %p1298_p7 = scmp.ne.s32.totalorder %s1296_s1, %s1297_s22  ;;  %p1303_p6 = scmp.lt.s32.totalorder %s1301_s17, %s1297_s22 }
  0xc9   : > { %v646_v53 = vmul.f32 %v2429_v50, %v2378_v41  ;;  %v745_v32 = vmul.f32 %v2430_v55, %v1711_v60  ;;  %v654_v49 = vmul.f32 %v2431_v7, %v2372_v36  ;;  %v692_v47 = vmul.f32 %v2432_v54, %v2384_v6  ;;  %v2434_v6 = vld [vmem:[#allocation24_spill] sm:$0xff] }
  0xca   : > { %v740_v9 = vadd.f32 %v736_v26, %v702_v61  ;;  %v649_v39 = vadd.f32 %v645_v44, %v611_v43  ;;  %v558_v16 = vadd.f32 %v554_v23, %v520_v34  ;;  %v700_v41 = vmul.f32 %v2433_v45, %v2383_v57  ;;  %p1299_p8 = pnand %p1298_p7, %p1443_p11  ;;  %p1304_p13 = por %p1303_p6, %p1302_p0 }
  0xcb   : > { %v738_v60 = vmul.f32 %v2023_v28, %v1858_v63  ;;  %v746_v3 = vmul.f32 %v2434_v6, %v1855_v15 }
  0xcc   : > { %v748_v58 = vadd.f32 %v744_v2, %v740_v9  ;;  %v657_v42 = vadd.f32 %v653_v35, %v649_v39  ;;  %v566_v11 = vadd.f32 %v562_v30, %v558_v16  ;;  %p1300_p10 = pneg %p1299_p8 }
  0xce   : > { %756 = vst [vmem:[%s2145_s13 + $0x8] sm:$0xff] %v748_v58  ;;  %v695_v29 = vadd.f32 %v691_v27, %v657_v42  ;;  %v604_v46 = vadd.f32 %v600_v62, %v566_v11  ;;  %p1305_p1 = pnand %p1304_p13, %p1300_p10 }
  0xd0   : > { %v703_v21 = vadd.f32 %v699_v8, %v695_v29  ;;  %v612_v22 = vadd.f32 %v608_v33, %v604_v46 }
  0xd2   : > { %v741_v17 = vadd.f32 %v737_v40, %v703_v21  ;;  %v650_v10 = vadd.f32 %v646_v53, %v612_v22 }
  0xd4   : > { %v749_v0 = vadd.f32 %v745_v32, %v741_v17  ;;  %v658_v37 = vadd.f32 %v654_v49, %v650_v10 }
  0xd6   : > { %757 = vst [vmem:[%s2145_s13 + $0x10] sm:$0xff] %v749_v0  ;;  %v696_v56 = vadd.f32 %v692_v47, %v658_v37 }
  0xd8   : > { %v704_v36 = vadd.f32 %v700_v41, %v696_v56 }
  0xda   : > { %v742_v19 = vadd.f32 %v738_v60, %v704_v36 }
  0xdc   : > { %v750_v57 = vadd.f32 %v746_v3, %v742_v19 }
  0xde   : > { %758 = vst [vmem:[%s2145_s13 + $0x18] sm:$0xff] %v750_v57 }
  0xdf   : > { %1308 = shalt.err (!%p1305_p1)
}
  0xe0   : > { %1070 = dma.vmem_to_hbm [thread:$0]  (%p1443_p11), %s795_s25, 512, %s797_s26, %s765_s11, %s1364_s21, %s1365_s8, %s1366_s12  }
  0xe1 PF: > { %s811_s20 = sand.u32 1, %s1347_s18   ;;  %p1087_p2 = pnand %p971_p9, %p1447_p12 }
  0xe2   : > { %s812_s27 = scalar_lea.sflag [#allocation4], %s811_s20 }
  0xe3   : > { %p1088_p3 = pneg %p1087_p2 }
  0xe5   : > { %1338 = dma.done.wait (%p1088_p3), %s812_s27, 512  }
  0xe6   : > { %1340 = vsyncadd (%p1088_p3), %s812_s27, 4294966784  ;;  %s822_s9 = scalar_lea.sflag [#allocation12], %s811_s20 }
  0xe7   : > { %1342 = dma.done.wait (%p1088_p3), %s822_s9, 512  }
  0xe8   : > { %1344 = vsyncadd (%p1088_p3), %s822_s9, 4294966784  ;;  %s2437_s21 = sld [smem:[#allocation20_spill]]  ;;  %s2440_s18 = smov %s1351_s19 }
  0xe9   : > { %s2438_s29 = sld [smem:[#allocation18_spill]] }
  0xea   : > { %s2439_s20 = sld [smem:[#allocation21_spill]] }
  0xee   : > { %p28_p11 = scmp.ge.s32.totalorder %s2437_s21, 4  }
  0xef   : > { %s2441_s19 = smov %s2438_s29 }
  0xf0   :  { %30 = sbr.rel (!%p28_p11) target bundleno = 13 (0xd), region = 149 }
  0xf5   :  { %828 = vsyncpa [#allocation3], 1 }
  0xf6   :  { %830 = vsyncpa [#allocation3 + $0x1], 1 }
  0xf7   :  { %831 = vsyncpa [#allocation6], 1 }
  0xf8   :  { %833 = vsyncpa [#allocation6 + $0x1], 1 }
  0xf9   :  { %834 = vsyncpa [#allocation9], 1 }
  0xfa   :  { %836 = vsyncpa [#allocation9 + $0x1], 1 }
  0xfb   :  { %837 = vsyncpa [#allocation4], 1 }
  0xfc   :  { %839 = vsyncpa [#allocation4 + $0x1], 1 }
  0xfd   :  { %840 = vsyncpa [#allocation12], 1 }
  0xfe   :  { %842 = vsyncpa [#allocation12 + $0x1], 1 }

</bundles_post_ra>
